<compile_context>
chip_gen: v7x
topology: tpu7x:2x2x1
jax: 0.10.0
libtpu: 0.0.40
codegen_flags: <defaults>
</compile_context>

<pallas_src>
import functools

import jax
import jax.numpy as jnp
from jax.experimental import pallas as pl
from jax.experimental.pallas import tpu as pltpu


# ------------------------------ in-kernel math ------------------------------

def _elu(x):
    # TODO(synk): jnp.expm1 would be marginally more accurate near 0; exp() is
    # used for guaranteed Mosaic lowering. min() keeps the discarded positive
    # branch finite (matches torch.nn.ELU semantics).
    return jnp.where(x > 0.0, x, jnp.exp(jnp.minimum(x, 0.0)) - 1.0)


def _bf16(x):
    return x.astype(jnp.bfloat16)


def vsn_kernel(
    # batch tile of the flattened embedding (already bf16)
    emb_ref,                                   # (TB, F) bf16, F = n_vars*d_in
    # fused first layer (shared input x): [ [Wskip|W1]_blk | [W1|Wskip]_flat ]
    wfa_ref, bfa_ref,                          # (F, 2VH+H+V) bf16, (1, 2VH+H+V) f32
    # flattened-inputs GRN tail (hidden=H, out=V)
    fw2_ref, fb2_ref,                          # W2            (H, H)  bf16, (1, H)
    fwb_ref, fbb_ref,                          # [W_val|W_gate](H, 2V) bf16, (1, 2V)
    fgm_ref, fbt_ref,                          # LayerNorm     (1, V),  (1, V)
    # per-variable GRN tails fused block-diagonally (hidden=H, out=H) x V
    vw2_ref, vb2_ref,                          # W2_blk        (VH, VH) bf16, (1, VH)
    vwb_ref, vbb_ref,                          # [Wv|Wg]_blk   (VH,2VH) bf16, (1, 2VH)
    vgm_ref, vbt_ref,                          # LayerNorm     (1, VH), (1, VH)
    # structural constants
    segS_ref,                                  # (VH, V)   segment-mean projector (1/H folded)
    segBT_ref,                                 # (3V, 3VH) block-diag 0/1 broadcast-back
    cproj_ref,                                 # (VH+V, OW) bf16 stacked [oproj; wemb]
    # output
    out_ref,                                   # (TB, OW) bf16
    *, n_vars, hidden, ln_eps=1e-5,
):
    V, H = n_vars, hidden
    VH = V * H

    x = emb_ref[...]                                                        # bf16

    # ---- fused first layer: per-variable (block-diag) + flattened GRN ------
    a_all = jnp.dot(x, wfa_ref[...], preferred_element_type=jnp.float32) + bfa_ref[...]
    skip_v = a_all[:, :VH]                     # lanes [0, VH)        vreg-aligned
    h_v = _elu(a_all[:, VH:2 * VH])            # lanes [VH, 2VH)      vreg-aligned
    h_f = _elu(a_all[:, 2 * VH:2 * VH + H])    # lanes [2VH, 2VH+H)   starts on vreg boundary
    skip_f = a_all[:, 2 * VH + H:]             # lanes [2VH+H, ...)   VPU-only use

    # ---------------- flattened GRN -> softmax over variables ----------------
    h_f = jnp.dot(_bf16(h_f), fw2_ref[...], preferred_element_type=jnp.float32) + fb2_ref[...]
    # TODO(synk): dropout is identity (eval mode); optional context path omitted (context=None).
    gv = jnp.dot(_bf16(h_f), fwb_ref[...], preferred_element_type=jnp.float32) + fbb_ref[...]
    y = skip_f + jax.nn.sigmoid(gv[:, V:]) * gv[:, :V]
    mu = jnp.mean(y, axis=-1, keepdims=True)
    d = y - mu
    var = jnp.mean(d * d, axis=-1, keepdims=True)
    logits = fgm_ref[...] * d * jax.lax.rsqrt(var + ln_eps) + fbt_ref[...]   # (TB, V)

    m = jnp.max(logits, axis=-1, keepdims=True)
    e = jnp.exp(logits - m)
    sw = e / jnp.sum(e, axis=-1, keepdims=True)          # exact divide: rows sum to 1

    # -------------- per-variable GRN tails, fused block-diagonally ----------
    h_v = jnp.dot(_bf16(h_v), vw2_ref[...], preferred_element_type=jnp.float32) + vb2_ref[...]
    gv = jnp.dot(_bf16(h_v), vwb_ref[...], preferred_element_type=jnp.float32) + vbb_ref[...]
    y = skip_v + jax.nn.sigmoid(gv[:, VH:]) * gv[:, :VH]                     # (TB, VH)

    # Segment-wise LayerNorm stats via indicator matmuls (one-pass variance).
    segS = segS_ref[...]
    mu = jnp.dot(y, segS, preferred_element_type=jnp.float32)                # (TB, V)  E[y]
    m2 = jnp.dot(y * y, segS, preferred_element_type=jnp.float32)            # (TB, V)  E[y^2]
    var = jnp.maximum(m2 - mu * mu, 0.0)
    # Single merged broadcast-back matmul for [mu | var | sw]; vreg-aligned slices.
    red = jnp.concatenate([mu, var, sw], axis=-1)                            # (TB, 3V)
    b = jnp.dot(red, segBT_ref[...], preferred_element_type=jnp.float32)     # (TB, 3VH)
    mu_b, var_b, sw_b = b[:, :VH], b[:, VH:2 * VH], b[:, 2 * VH:]
    t = vgm_ref[...] * (y - mu_b) * jax.lax.rsqrt(var_b + ln_eps) + vbt_ref[...]

    # Weighted combine over variables + sparse-weight packing: one bf16 matmul
    # into the lane-dense output slab (combined at lanes [0,H), weights at [H,H+V)).
    lhs = jnp.concatenate([_bf16(t * sw_b), _bf16(sw)], axis=-1)             # (TB, VH+V)
    out_ref[...] = jnp.dot(lhs, cproj_ref[...],
                           preferred_element_type=jnp.float32).astype(out_ref.dtype)


# ------------------------------ host-side packing ----------------------------

def _round_up(x, m):
    return ((x + m - 1) // m) * m


def _init_grn_params(key, in_size, hidden, out_size, scale=0.1):
    ks = jax.random.split(key, 10)
    f32 = jnp.float32
    n = lambda k, shape, s: jax.random.normal(k, shape, f32) * s
    return dict(
        w_skip=n(ks[0], (in_size, out_size), scale), b_skip=n(ks[1], (out_size,), 0.05),
        w1=n(ks[2], (in_size, hidden), scale),       b1=n(ks[3], (hidden,), 0.05),
        w2=n(ks[4], (hidden, hidden), scale),        b2=n(ks[5], (hidden,), 0.05),
        w_v=n(ks[6], (hidden, out_size), scale),     b_v=n(ks[7], (out_size,), 0.05),
        w_g=n(ks[8], (hidden, out_size), scale),     b_g=n(ks[9], (out_size,), 0.05),
        gamma=jnp.ones((out_size,), f32),            beta=jnp.zeros((out_size,), f32),
    )


def _block_diag(mats):
    r, c = mats[0].shape
    out = jnp.zeros((len(mats) * r, len(mats) * c), mats[0].dtype)
    for i, m in enumerate(mats):
        out = out.at[i * r:(i + 1) * r, i * c:(i + 1) * c].set(m)
    return out


def pack_vsn_params(flat_p, var_ps, n_vars, hidden, out_width):
    """Pack PyTorch-equivalent VSN parameters into the kernel's fused layouts."""
    V, H = n_vars, hidden
    VH = V * H
    bf16 = jnp.bfloat16
    cat = lambda name: jnp.concatenate([p[name] for p in var_ps])

    # Per-variable first layer, block-diagonal: [W_skip_blk | W1_blk]  -> (F, 2VH).
    vwa = jnp.concatenate([_block_diag([p["w_skip"] for p in var_ps]),
                           _block_diag([p["w1"] for p in var_ps])], axis=1)
    vba = jnp.concatenate([cat("b_skip"), cat("b1")])
    # Flattened-GRN first layer reordered to [W1 | W_skip] so the ELU / fw2
    # operand starts exactly on a vreg boundary inside the fused matmul output.
    fwa = jnp.concatenate([flat_p["w1"], flat_p["w_skip"]], axis=1)
    fba = jnp.concatenate([flat_p["b1"], flat_p["b_skip"]])
    # Single fused first-layer matmul (both GRN stacks share the input x).
    w_first = jnp.concatenate([vwa, fwa], axis=1).astype(bf16)      # (F, 2VH+H+V)
    b_first = jnp.concatenate([vba, fba])[None, :]

    fw2 = flat_p["w2"].astype(bf16)
    fb2 = flat_p["b2"][None, :]
    fwb = jnp.concatenate([flat_p["w_v"], flat_p["w_g"]], axis=1).astype(bf16)
    fbb = jnp.concatenate([flat_p["b_v"], flat_p["b_g"]])[None, :]
    fgm = flat_p["gamma"][None, :]
    fbt = flat_p["beta"][None, :]

    vw2 = _block_diag([p["w2"] for p in var_ps]).astype(bf16)
    vb2 = cat("b2")[None, :]
    vwb = jnp.concatenate([_block_diag([p["w_v"] for p in var_ps]),
                           _block_diag([p["w_g"] for p in var_ps])], axis=1).astype(bf16)
    vbb = jnp.concatenate([cat("b_v"), cat("b_g")])[None, :]
    vgm = cat("gamma")[None, :]
    vbt = cat("beta")[None, :]

    # Structural constants.
    eye_v = jnp.eye(V, dtype=jnp.float32)
    seg_bt = jnp.repeat(eye_v, H, axis=1)                    # (V, VH)  0/1 broadcast-back
    seg_s = seg_bt.T / float(H)                              # (VH, V)  segment mean (1/H folded)
    seg_bt3 = _block_diag([seg_bt, seg_bt, seg_bt])          # (3V, 3VH)
    oproj = jnp.zeros((VH, out_width), jnp.float32)
    oproj = oproj.at[:, :H].set(jnp.tile(jnp.eye(H, dtype=jnp.float32), (V, 1)))
    wemb = jnp.zeros((V, out_width), jnp.float32).at[:, H:H + V].set(eye_v)
    cproj = jnp.concatenate([oproj, wemb], axis=0).astype(bf16)   # (VH+V, OW), 0/1 exact in bf16

    return [w_first, b_first, fw2, fb2, fwb, fbb, fgm, fbt,
            vw2, vb2, vwb, vbb, vgm, vbt, seg_s, seg_bt3, cproj]


# ------------------------------- wrapper -------------------------------------

def variable_selection_network(embedding, params, n_vars, hidden, *, block_rows=512):
    """Non-temporal VSN forward. embedding: (B, n_vars*input_size) float32."""
    B, F = embedding.shape
    V, H = n_vars, hidden
    OW = params[-1].shape[1]

    # Batch tile: big enough to fill the MXU M dimension (>=128, ideally 256+)
    # and amortize per-grid-step overhead, but split so that when one tile
    # would cover the whole batch we still emit >=2 blocks for v7x's 2 TCs.
    TB = min(block_rows, max(8, _round_up(B, 8)))
    if TB == _round_up(B, 8) and TB >= 256:
        TB = _round_up((TB + 1) // 2, 8)
    n_blocks = pl.cdiv(B, TB)
    Bp = n_blocks * TB
    if Bp != B:
        embedding = jnp.pad(embedding, ((0, Bp - B), (0, 0)))
    embedding = embedding.astype(jnp.bfloat16)   # halve streamed input HBM bytes

    row_spec = lambda shape: pl.BlockSpec(shape, lambda i: (i, 0))
    const_spec = lambda a: pl.BlockSpec(a.shape, lambda i: (0, 0))   # VMEM-resident
    # TODO(synk): constant-index weights could be single-buffered via
    # pipeline_mode=pl.Buffered(1); left at the default (tiny ~200 KB today).

    # Double-buffered bf16 row tiles + (double-buffered) resident weights + headroom.
    tile_bytes = (TB * F + TB * OW) * 2 * 2
    weight_bytes = 2 * sum(int(a.size) * a.dtype.itemsize for a in params)
    vmem_limit = int(min(48 << 20, max(16 << 20, tile_bytes + weight_bytes + (4 << 20))))

    kernel = functools.partial(vsn_kernel, n_vars=V, hidden=H)
    slab = pl.pallas_call(
        kernel,
        grid=(n_blocks,),
        in_specs=[row_spec((TB, F))] + [const_spec(a) for a in params],
        out_specs=row_spec((TB, OW)),
        out_shape=jax.ShapeDtypeStruct((Bp, OW), jnp.bfloat16),
        compiler_params=pltpu.CompilerParams(
            dimension_semantics=("parallel",),     # rows independent -> megacore/2-TC
            vmem_limit_bytes=vmem_limit,
        ),
    )(embedding, *params)

    combined = slab[:B, :H].astype(jnp.float32)                       # (B, hidden)
    sparse_weights = slab[:B, H:H + V].astype(jnp.float32)[:, None, :]  # (B, 1, n_vars)
    return combined, sparse_weights


# ----------------------------- pure-JAX reference ----------------------------

def _grn_reference(x, p):
    skip = x @ p["w_skip"] + p["b_skip"]
    h = jax.nn.elu(x @ p["w1"] + p["b1"])
    h = h @ p["w2"] + p["b2"]
    y = skip + jax.nn.sigmoid(h @ p["w_g"] + p["b_g"]) * (h @ p["w_v"] + p["b_v"])
    mu = jnp.mean(y, axis=-1, keepdims=True)
    var = jnp.mean((y - mu) ** 2, axis=-1, keepdims=True)
    return p["gamma"] * (y - mu) * jax.lax.rsqrt(var + 1e-5) + p["beta"]


def _vsn_reference(embedding, flat_p, var_ps, n_vars, d_in):
    sw = jax.nn.softmax(_grn_reference(embedding, flat_p), axis=-1)[:, None, :]
    t = jnp.stack([_grn_reference(embedding[:, i * d_in:(i + 1) * d_in], var_ps[i])
                   for i in range(n_vars)], axis=-1)          # (B, H, V)
    return (t * sw).sum(axis=-1), sw


# --------------------------------- driver ------------------------------------

if __name__ == "__main__":
    # VariableSelectionNetwork(input_size=8, output_size=4, hidden_size=32, dropout=0)
    d_in, n_vars, hidden = 8, 4, 32          # F = 32, n_vars*hidden = 128 lanes
    batch = 64

    root = jax.random.PRNGKey(0)
    k_emb, k_flat, *k_vars = jax.random.split(root, 2 + n_vars)

    embedding = jax.random.normal(k_emb, (batch, n_vars * d_in), jnp.float32)

    flat_p = _init_grn_params(k_flat, n_vars * d_in, hidden, n_vars)
    var_ps = [_init_grn_params(k_vars[i], d_in, hidden, hidden) for i in range(n_vars)]

    out_width = _round_up(hidden + n_vars, 128)   # lane-dense packed output slab
    params = pack_vsn_params(flat_p, var_ps, n_vars, hidden, out_width)

    combined, sparse_weights = variable_selection_network(
        embedding, params, n_vars, hidden)
    jax.block_until_ready((combined, sparse_weights))

    assert combined.shape == (batch, hidden)
    assert sparse_weights.shape == (batch, 1, n_vars)

    # Numerical check vs f32 reference (loose tolerance: bf16 matmuls / bf16
    # I/O in the kernel vs full f32 in the reference).
    ref_c, ref_w = _vsn_reference(embedding, flat_p, var_ps, n_vars, d_in)
    assert float(jnp.max(jnp.abs(combined - ref_c))) < 0.15
    assert float(jnp.max(jnp.abs(sparse_weights - ref_w))) < 0.05

    print("KERNEL_OK")
</pallas_src>

<mosaic_0001>
module attributes {stable_mosaic.version = 11 : i64} {
  func.func @vsn_kernel(%arg0: i32, %arg1: memref<64x32xbf16, #tpu.memory_space<vmem>>, %arg2: memref<32x292xbf16, #tpu.memory_space<vmem>>, %arg3: memref<1x292xf32, #tpu.memory_space<vmem>>, %arg4: memref<32x32xbf16, #tpu.memory_space<vmem>>, %arg5: memref<1x32xf32, #tpu.memory_space<vmem>>, %arg6: memref<32x8xbf16, #tpu.memory_space<vmem>>, %arg7: memref<1x8xf32, #tpu.memory_space<vmem>>, %arg8: memref<1x4xf32, #tpu.memory_space<vmem>>, %arg9: memref<1x4xf32, #tpu.memory_space<vmem>>, %arg10: memref<128x128xbf16, #tpu.memory_space<vmem>>, %arg11: memref<1x128xf32, #tpu.memory_space<vmem>>, %arg12: memref<128x256xbf16, #tpu.memory_space<vmem>>, %arg13: memref<1x256xf32, #tpu.memory_space<vmem>>, %arg14: memref<1x128xf32, #tpu.memory_space<vmem>>, %arg15: memref<1x128xf32, #tpu.memory_space<vmem>>, %arg16: memref<128x4xf32, #tpu.memory_space<vmem>>, %arg17: memref<12x384xf32, #tpu.memory_space<vmem>>, %arg18: memref<132x128xbf16, #tpu.memory_space<vmem>>, %arg19: memref<64x128xbf16, #tpu.memory_space<vmem>>) attributes {dimension_semantics = [#tpu.dimension_semantics<parallel>], iteration_bounds = array<i64: 1>, scalar_prefetch = 0 : i64, scratch_operands = 0 : i64, tpu.core_type = #tpu.core_type<tc>, window_params = [{transform_indices = @transform_0, window_bounds = array<i64: 64, 32>}, {pipeline_mode = #tpu.pipeline_mode<synchronous>, transform_indices = @transform_1, window_bounds = array<i64: 32, 292>}, {pipeline_mode = #tpu.pipeline_mode<synchronous>, transform_indices = @transform_2, window_bounds = array<i64: 1, 292>}, {pipeline_mode = #tpu.pipeline_mode<synchronous>, transform_indices = @transform_3, window_bounds = array<i64: 32, 32>}, {pipeline_mode = #tpu.pipeline_mode<synchronous>, transform_indices = @transform_4, window_bounds = array<i64: 1, 32>}, {pipeline_mode = #tpu.pipeline_mode<synchronous>, transform_indices = @transform_5, window_bounds = array<i64: 32, 8>}, {pipeline_mode = #tpu.pipeline_mode<synchronous>, transform_indices = @transform_6, window_bounds = array<i64: 1, 8>}, {pipeline_mode = #tpu.pipeline_mode<synchronous>, transform_indices = @transform_7, window_bounds = array<i64: 1, 4>}, {pipeline_mode = #tpu.pipeline_mode<synchronous>, transform_indices = @transform_8, window_bounds = array<i64: 1, 4>}, {pipeline_mode = #tpu.pipeline_mode<synchronous>, transform_indices = @transform_9, window_bounds = array<i64: 128, 128>}, {pipeline_mode = #tpu.pipeline_mode<synchronous>, transform_indices = @transform_10, window_bounds = array<i64: 1, 128>}, {pipeline_mode = #tpu.pipeline_mode<synchronous>, transform_indices = @transform_11, window_bounds = array<i64: 128, 256>}, {pipeline_mode = #tpu.pipeline_mode<synchronous>, transform_indices = @transform_12, window_bounds = array<i64: 1, 256>}, {pipeline_mode = #tpu.pipeline_mode<synchronous>, transform_indices = @transform_13, window_bounds = array<i64: 1, 128>}, {pipeline_mode = #tpu.pipeline_mode<synchronous>, transform_indices = @transform_14, window_bounds = array<i64: 1, 128>}, {pipeline_mode = #tpu.pipeline_mode<synchronous>, transform_indices = @transform_15, window_bounds = array<i64: 128, 4>}, {pipeline_mode = #tpu.pipeline_mode<synchronous>, transform_indices = @transform_16, window_bounds = array<i64: 12, 384>}, {pipeline_mode = #tpu.pipeline_mode<synchronous>, transform_indices = @transform_17, window_bounds = array<i64: 132, 128>}, {transform_indices = @transform_18, window_bounds = array<i64: 64, 128>}]} {
    %c0 = arith.constant 0 : index
    %c0_0 = arith.constant 0 : index
    %0 = vector.load %arg1[%c0, %c0_0] : memref<64x32xbf16, #tpu.memory_space<vmem>>, vector<64x32xbf16>
    %c0_1 = arith.constant 0 : index
    %c0_2 = arith.constant 0 : index
    %1 = vector.load %arg2[%c0_1, %c0_2] : memref<32x292xbf16, #tpu.memory_space<vmem>>, vector<32x292xbf16>
    %cst = arith.constant dense<0.000000e+00> : vector<64x292xf32>
    %2 = tpu.matmul %0, %1, %cst {dimension_numbers = #tpu.dot_dimension_numbers<[1], [0], [0], [1], [0, 0, 1, 1], [], []>} : vector<64x32xbf16>, vector<32x292xbf16>, vector<64x292xf32> -> vector<64x292xf32>
    %c0_3 = arith.constant 0 : index
    %c0_4 = arith.constant 0 : index
    %3 = vector.load %arg3[%c0_3, %c0_4] : memref<1x292xf32, #tpu.memory_space<vmem>>, vector<1x292xf32>
    %4 = vector.broadcast %3 : vector<1x292xf32> to vector<64x292xf32>
    %5 = arith.addf %2, %4 : vector<64x292xf32>
    %6 = vector.extract_strided_slice %5 {offsets = [0, 0], sizes = [64, 128], strides = [1, 1]} : vector<64x292xf32> to vector<64x128xf32>
    %7 = vector.extract_strided_slice %5 {offsets = [0, 128], sizes = [64, 128], strides = [1, 1]} : vector<64x292xf32> to vector<64x128xf32>
    %cst_5 = arith.constant 0.000000e+00 : f32
    %8 = vector.broadcast %cst_5 : f32 to vector<64x128xf32>
    %9 = arith.cmpf ogt, %7, %8 : vector<64x128xf32>
    %cst_6 = arith.constant 0.000000e+00 : f32
    %10 = vector.broadcast %cst_6 : f32 to vector<64x128xf32>
    %11 = arith.minimumf %7, %10 : vector<64x128xf32>
    %12 = math.exp %11 : vector<64x128xf32>
    %cst_7 = arith.constant 1.000000e+00 : f32
    %13 = vector.broadcast %cst_7 : f32 to vector<64x128xf32>
    %14 = arith.subf %12, %13 : vector<64x128xf32>
    %15 = arith.select %9, %7, %14 : vector<64x128xi1>, vector<64x128xf32>
    %16 = vector.extract_strided_slice %5 {offsets = [0, 256], sizes = [64, 32], strides = [1, 1]} : vector<64x292xf32> to vector<64x32xf32>
    %cst_8 = arith.constant 0.000000e+00 : f32
    %17 = vector.broadcast %cst_8 : f32 to vector<64x32xf32>
    %18 = arith.cmpf ogt, %16, %17 : vector<64x32xf32>
    %cst_9 = arith.constant 0.000000e+00 : f32
    %19 = vector.broadcast %cst_9 : f32 to vector<64x32xf32>
    %20 = arith.minimumf %16, %19 : vector<64x32xf32>
    %21 = math.exp %20 : vector<64x32xf32>
    %cst_10 = arith.constant 1.000000e+00 : f32
    %22 = vector.broadcast %cst_10 : f32 to vector<64x32xf32>
    %23 = arith.subf %21, %22 : vector<64x32xf32>
    %24 = arith.select %18, %16, %23 : vector<64x32xi1>, vector<64x32xf32>
    %25 = vector.extract_strided_slice %5 {offsets = [0, 288], sizes = [64, 4], strides = [1, 1]} : vector<64x292xf32> to vector<64x4xf32>
    %26 = arith.truncf %24 : vector<64x32xf32> to vector<64x32xbf16>
    %c0_11 = arith.constant 0 : index
    %c0_12 = arith.constant 0 : index
    %27 = vector.load %arg4[%c0_11, %c0_12] : memref<32x32xbf16, #tpu.memory_space<vmem>>, vector<32x32xbf16>
    %cst_13 = arith.constant dense<0.000000e+00> : vector<64x32xf32>
    %28 = tpu.matmul %26, %27, %cst_13 {dimension_numbers = #tpu.dot_dimension_numbers<[1], [0], [0], [1], [0, 0, 1, 1], [], []>} : vector<64x32xbf16>, vector<32x32xbf16>, vector<64x32xf32> -> vector<64x32xf32>
    %c0_14 = arith.constant 0 : index
    %c0_15 = arith.constant 0 : index
    %29 = vector.load %arg5[%c0_14, %c0_15] : memref<1x32xf32, #tpu.memory_space<vmem>>, vector<1x32xf32>
    %30 = vector.broadcast %29 : vector<1x32xf32> to vector<64x32xf32>
    %31 = arith.addf %28, %30 : vector<64x32xf32>
    %32 = arith.truncf %31 : vector<64x32xf32> to vector<64x32xbf16>
    %c0_16 = arith.constant 0 : index
    %c0_17 = arith.constant 0 : index
    %33 = vector.load %arg6[%c0_16, %c0_17] : memref<32x8xbf16, #tpu.memory_space<vmem>>, vector<32x8xbf16>
    %cst_18 = arith.constant dense<0.000000e+00> : vector<64x8xf32>
    %34 = tpu.matmul %32, %33, %cst_18 {dimension_numbers = #tpu.dot_dimension_numbers<[1], [0], [0], [1], [0, 0, 1, 1], [], []>} : vector<64x32xbf16>, vector<32x8xbf16>, vector<64x8xf32> -> vector<64x8xf32>
    %c0_19 = arith.constant 0 : index
    %c0_20 = arith.constant 0 : index
    %35 = vector.load %arg7[%c0_19, %c0_20] : memref<1x8xf32, #tpu.memory_space<vmem>>, vector<1x8xf32>
    %36 = vector.broadcast %35 : vector<1x8xf32> to vector<64x8xf32>
    %37 = arith.addf %34, %36 : vector<64x8xf32>
    %38 = vector.extract_strided_slice %37 {offsets = [0, 4], sizes = [64, 4], strides = [1, 1]} : vector<64x8xf32> to vector<64x4xf32>
    %39 = arith.negf %38 : vector<64x4xf32>
    %40 = math.exp %39 : vector<64x4xf32>
    %cst_21 = arith.constant 1.000000e+00 : f32
    %41 = vector.broadcast %cst_21 : f32 to vector<64x4xf32>
    %42 = arith.addf %41, %40 : vector<64x4xf32>
    %43 = arith.divf %41, %42 : vector<64x4xf32>
    %44 = vector.extract_strided_slice %37 {offsets = [0, 0], sizes = [64, 4], strides = [1, 1]} : vector<64x8xf32> to vector<64x4xf32>
    %45 = arith.mulf %43, %44 : vector<64x4xf32>
    %46 = arith.addf %25, %45 : vector<64x4xf32>
    %cst_22 = arith.constant dense<0.000000e+00> : vector<64xf32>
    %47 = vector.multi_reduction <add>, %46, %cst_22 [1] : vector<64x4xf32> to vector<64xf32>
    %48 = vector.shape_cast %47 : vector<64xf32> to vector<64x1xf32>
    %cst_23 = arith.constant 4.000000e+00 : f32
    %49 = vector.broadcast %cst_23 : f32 to vector<64x1xf32>
    %50 = arith.divf %48, %49 : vector<64x1xf32>
    %51 = vector.broadcast %50 : vector<64x1xf32> to vector<64x4xf32>
    %52 = arith.subf %46, %51 : vector<64x4xf32>
    %53 = arith.mulf %52, %52 : vector<64x4xf32>
    %cst_24 = arith.constant dense<0.000000e+00> : vector<64xf32>
    %54 = vector.multi_reduction <add>, %53, %cst_24 [1] : vector<64x4xf32> to vector<64xf32>
    %55 = vector.shape_cast %54 : vector<64xf32> to vector<64x1xf32>
    %cst_25 = arith.constant 4.000000e+00 : f32
    %56 = vector.broadcast %cst_25 : f32 to vector<64x1xf32>
    %57 = arith.divf %55, %56 : vector<64x1xf32>
    %c0_26 = arith.constant 0 : index
    %c0_27 = arith.constant 0 : index
    %58 = vector.load %arg8[%c0_26, %c0_27] : memref<1x4xf32, #tpu.memory_space<vmem>>, vector<1x4xf32>
    %59 = vector.broadcast %58 : vector<1x4xf32> to vector<64x4xf32>
    %60 = arith.mulf %59, %52 : vector<64x4xf32>
    %cst_28 = arith.constant 9.99999974E-6 : f32
    %61 = vector.broadcast %cst_28 : f32 to vector<64x1xf32>
    %62 = arith.addf %57, %61 : vector<64x1xf32>
    %63 = math.rsqrt %62 : vector<64x1xf32>
    %64 = vector.broadcast %63 : vector<64x1xf32> to vector<64x4xf32>
    %65 = arith.mulf %60, %64 : vector<64x4xf32>
    %c0_29 = arith.constant 0 : index
    %c0_30 = arith.constant 0 : index
    %66 = vector.load %arg9[%c0_29, %c0_30] : memref<1x4xf32, #tpu.memory_space<vmem>>, vector<1x4xf32>
    %67 = vector.broadcast %66 : vector<1x4xf32> to vector<64x4xf32>
    %68 = arith.addf %65, %67 : vector<64x4xf32>
    %cst_31 = arith.constant dense<0xFF800000> : vector<64xf32>
    %69 = vector.multi_reduction <maximumf>, %68, %cst_31 [1] : vector<64x4xf32> to vector<64xf32>
    %70 = vector.shape_cast %69 : vector<64xf32> to vector<64x1xf32>
    %71 = vector.broadcast %70 : vector<64x1xf32> to vector<64x4xf32>
    %72 = arith.subf %68, %71 : vector<64x4xf32>
    %73 = math.exp %72 : vector<64x4xf32>
    %cst_32 = arith.constant dense<0.000000e+00> : vector<64xf32>
    %74 = vector.multi_reduction <add>, %73, %cst_32 [1] : vector<64x4xf32> to vector<64xf32>
    %75 = vector.shape_cast %74 : vector<64xf32> to vector<64x1xf32>
    %76 = vector.broadcast %75 : vector<64x1xf32> to vector<64x4xf32>
    %77 = arith.divf %73, %76 : vector<64x4xf32>
    %78 = arith.truncf %15 : vector<64x128xf32> to vector<64x128xbf16>
    %c0_33 = arith.constant 0 : index
    %c0_34 = arith.constant 0 : index
    %79 = vector.load %arg10[%c0_33, %c0_34] : memref<128x128xbf16, #tpu.memory_space<vmem>>, vector<128x128xbf16>
    %cst_35 = arith.constant dense<0.000000e+00> : vector<64x128xf32>
    %80 = tpu.matmul %78, %79, %cst_35 {dimension_numbers = #tpu.dot_dimension_numbers<[1], [0], [0], [1], [0, 0, 1, 1], [], []>} : vector<64x128xbf16>, vector<128x128xbf16>, vector<64x128xf32> -> vector<64x128xf32>
    %c0_36 = arith.constant 0 : index
    %c0_37 = arith.constant 0 : index
    %81 = vector.load %arg11[%c0_36, %c0_37] : memref<1x128xf32, #tpu.memory_space<vmem>>, vector<1x128xf32>
    %82 = vector.broadcast %81 : vector<1x128xf32> to vector<64x128xf32>
    %83 = arith.addf %80, %82 : vector<64x128xf32>
    %84 = arith.truncf %83 : vector<64x128xf32> to vector<64x128xbf16>
    %c0_38 = arith.constant 0 : index
    %c0_39 = arith.constant 0 : index
    %85 = vector.load %arg12[%c0_38, %c0_39] : memref<128x256xbf16, #tpu.memory_space<vmem>>, vector<128x256xbf16>
    %cst_40 = arith.constant dense<0.000000e+00> : vector<64x256xf32>
    %86 = tpu.matmul %84, %85, %cst_40 {dimension_numbers = #tpu.dot_dimension_numbers<[1], [0], [0], [1], [0, 0, 1, 1], [], []>} : vector<64x128xbf16>, vector<128x256xbf16>, vector<64x256xf32> -> vector<64x256xf32>
    %c0_41 = arith.constant 0 : index
    %c0_42 = arith.constant 0 : index
    %87 = vector.load %arg13[%c0_41, %c0_42] : memref<1x256xf32, #tpu.memory_space<vmem>>, vector<1x256xf32>
    %88 = vector.broadcast %87 : vector<1x256xf32> to vector<64x256xf32>
    %89 = arith.addf %86, %88 : vector<64x256xf32>
    %90 = vector.extract_strided_slice %89 {offsets = [0, 128], sizes = [64, 128], strides = [1, 1]} : vector<64x256xf32> to vector<64x128xf32>
    %91 = arith.negf %90 : vector<64x128xf32>
    %92 = math.exp %91 : vector<64x128xf32>
    %cst_43 = arith.constant 1.000000e+00 : f32
    %93 = vector.broadcast %cst_43 : f32 to vector<64x128xf32>
    %94 = arith.addf %93, %92 : vector<64x128xf32>
    %95 = arith.divf %93, %94 : vector<64x128xf32>
    %96 = vector.extract_strided_slice %89 {offsets = [0, 0], sizes = [64, 128], strides = [1, 1]} : vector<64x256xf32> to vector<64x128xf32>
    %97 = arith.mulf %95, %96 : vector<64x128xf32>
    %98 = arith.addf %6, %97 : vector<64x128xf32>
    %c0_44 = arith.constant 0 : index
    %c0_45 = arith.constant 0 : index
    %99 = vector.load %arg16[%c0_44, %c0_45] : memref<128x4xf32, #tpu.memory_space<vmem>>, vector<128x4xf32>
    %cst_46 = arith.constant dense<0.000000e+00> : vector<64x4xf32>
    %100 = tpu.matmul %98, %99, %cst_46 {dimension_numbers = #tpu.dot_dimension_numbers<[1], [0], [0], [1], [0, 0, 1, 1], [], []>} : vector<64x128xf32>, vector<128x4xf32>, vector<64x4xf32> -> vector<64x4xf32>
    %101 = arith.mulf %98, %98 : vector<64x128xf32>
    %cst_47 = arith.constant dense<0.000000e+00> : vector<64x4xf32>
    %102 = tpu.matmul %101, %99, %cst_47 {dimension_numbers = #tpu.dot_dimension_numbers<[1], [0], [0], [1], [0, 0, 1, 1], [], []>} : vector<64x128xf32>, vector<128x4xf32>, vector<64x4xf32> -> vector<64x4xf32>
    %103 = arith.mulf %100, %100 : vector<64x4xf32>
    %104 = arith.subf %102, %103 : vector<64x4xf32>
    %cst_48 = arith.constant 0.000000e+00 : f32
    %105 = vector.broadcast %cst_48 : f32 to vector<64x4xf32>
    %106 = arith.maximumf %104, %105 : vector<64x4xf32>
    %107 = tpu.concatenate %100, %106, %77 in 1 : vector<64x4xf32>, vector<64x4xf32>, vector<64x4xf32> -> vector<64x12xf32>
    %c0_49 = arith.constant 0 : index
    %c0_50 = arith.constant 0 : index
    %108 = vector.load %arg17[%c0_49, %c0_50] : memref<12x384xf32, #tpu.memory_space<vmem>>, vector<12x384xf32>
    %cst_51 = arith.constant dense<0.000000e+00> : vector<64x384xf32>
    %109 = tpu.matmul %107, %108, %cst_51 {dimension_numbers = #tpu.dot_dimension_numbers<[1], [0], [0], [1], [0, 0, 1, 1], [], []>} : vector<64x12xf32>, vector<12x384xf32>, vector<64x384xf32> -> vector<64x384xf32>
    %110 = vector.extract_strided_slice %109 {offsets = [0, 0], sizes = [64, 128], strides = [1, 1]} : vector<64x384xf32> to vector<64x128xf32>
    %111 = vector.extract_strided_slice %109 {offsets = [0, 128], sizes = [64, 128], strides = [1, 1]} : vector<64x384xf32> to vector<64x128xf32>
    %112 = vector.extract_strided_slice %109 {offsets = [0, 256], sizes = [64, 128], strides = [1, 1]} : vector<64x384xf32> to vector<64x128xf32>
    %c0_52 = arith.constant 0 : index
    %c0_53 = arith.constant 0 : index
    %113 = vector.load %arg14[%c0_52, %c0_53] : memref<1x128xf32, #tpu.memory_space<vmem>>, vector<1x128xf32>
    %114 = arith.subf %98, %110 : vector<64x128xf32>
    %115 = vector.broadcast %113 : vector<1x128xf32> to vector<64x128xf32>
    %116 = arith.mulf %115, %114 : vector<64x128xf32>
    %cst_54 = arith.constant 9.99999974E-6 : f32
    %117 = vector.broadcast %cst_54 : f32 to vector<64x128xf32>
    %118 = arith.addf %111, %117 : vector<64x128xf32>
    %119 = math.rsqrt %118 : vector<64x128xf32>
    %120 = arith.mulf %116, %119 : vector<64x128xf32>
    %c0_55 = arith.constant 0 : index
    %c0_56 = arith.constant 0 : index
    %121 = vector.load %arg15[%c0_55, %c0_56] : memref<1x128xf32, #tpu.memory_space<vmem>>, vector<1x128xf32>
    %122 = vector.broadcast %121 : vector<1x128xf32> to vector<64x128xf32>
    %123 = arith.addf %120, %122 : vector<64x128xf32>
    %124 = arith.mulf %123, %112 : vector<64x128xf32>
    %125 = arith.truncf %124 : vector<64x128xf32> to vector<64x128xbf16>
    %126 = arith.truncf %77 : vector<64x4xf32> to vector<64x4xbf16>
    %127 = tpu.concatenate %125, %126 in 1 : vector<64x128xbf16>, vector<64x4xbf16> -> vector<64x132xbf16>
    %c0_57 = arith.constant 0 : index
    %c0_58 = arith.constant 0 : index
    %128 = vector.load %arg18[%c0_57, %c0_58] : memref<132x128xbf16, #tpu.memory_space<vmem>>, vector<132x128xbf16>
    %cst_59 = arith.constant dense<0.000000e+00> : vector<64x128xf32>
    %129 = tpu.matmul %127, %128, %cst_59 {dimension_numbers = #tpu.dot_dimension_numbers<[1], [0], [0], [1], [0, 0, 1, 1], [], []>} : vector<64x132xbf16>, vector<132x128xbf16>, vector<64x128xf32> -> vector<64x128xf32>
    %130 = arith.truncf %129 : vector<64x128xf32> to vector<64x128xbf16>
    %c0_60 = arith.constant 0 : index
    %c0_61 = arith.constant 0 : index
    %131 = vector.load %arg19[%c0_60, %c0_61] : memref<64x128xbf16, #tpu.memory_space<vmem>>, vector<64x128xbf16>
    tpu.vector_store %arg19[%c0_60, %c0_61], %130 {strides = array<i32>} : memref<64x128xbf16, #tpu.memory_space<vmem>>, vector<64x128xbf16>,
    return
  }
  func.func @transform_0(%arg0: i32) -> (i32, i32) {
    %c0_i32 = arith.constant 0 : i32
    %c0_i32_0 = arith.constant 0 : i32
    return %arg0, %c0_i32 : i32, i32
  }
  func.func @transform_1(%arg0: i32) -> (i32, i32) {
    %c0_i32 = arith.constant 0 : i32
    %c0_i32_0 = arith.constant 0 : i32
    %c0_i32_1 = arith.constant 0 : i32
    return %c0_i32, %c0_i32_0 : i32, i32
  }
  func.func @transform_2(%arg0: i32) -> (i32, i32) {
    %c0_i32 = arith.constant 0 : i32
    %c0_i32_0 = arith.constant 0 : i32
    %c0_i32_1 = arith.constant 0 : i32
    return %c0_i32, %c0_i32_0 : i32, i32
  }
  func.func @transform_3(%arg0: i32) -> (i32, i32) {
    %c0_i32 = arith.constant 0 : i32
    %c0_i32_0 = arith.constant 0 : i32
    %c0_i32_1 = arith.constant 0 : i32
    return %c0_i32, %c0_i32_0 : i32, i32
  }
  func.func @transform_4(%arg0: i32) -> (i32, i32) {
    %c0_i32 = arith.constant 0 : i32
    %c0_i32_0 = arith.constant 0 : i32
    %c0_i32_1 = arith.constant 0 : i32
    return %c0_i32, %c0_i32_0 : i32, i32
  }
  func.func @transform_5(%arg0: i32) -> (i32, i32) {
    %c0_i32 = arith.constant 0 : i32
    %c0_i32_0 = arith.constant 0 : i32
    %c0_i32_1 = arith.constant 0 : i32
    return %c0_i32, %c0_i32_0 : i32, i32
  }
  func.func @transform_6(%arg0: i32) -> (i32, i32) {
    %c0_i32 = arith.constant 0 : i32
    %c0_i32_0 = arith.constant 0 : i32
    %c0_i32_1 = arith.constant 0 : i32
    return %c0_i32, %c0_i32_0 : i32, i32
  }
  func.func @transform_7(%arg0: i32) -> (i32, i32) {
    %c0_i32 = arith.constant 0 : i32
    %c0_i32_0 = arith.constant 0 : i32
    %c0_i32_1 = arith.constant 0 : i32
    return %c0_i32, %c0_i32_0 : i32, i32
  }
  func.func @transform_8(%arg0: i32) -> (i32, i32) {
    %c0_i32 = arith.constant 0 : i32
    %c0_i32_0 = arith.constant 0 : i32
    %c0_i32_1 = arith.constant 0 : i32
    return %c0_i32, %c0_i32_0 : i32, i32
  }
  func.func @transform_9(%arg0: i32) -> (i32, i32) {
    %c0_i32 = arith.constant 0 : i32
    %c0_i32_0 = arith.constant 0 : i32
    %c0_i32_1 = arith.constant 0 : i32
    return %c0_i32, %c0_i32_0 : i32, i32
  }
  func.func @transform_10(%arg0: i32) -> (i32, i32) {
    %c0_i32 = arith.constant 0 : i32
    %c0_i32_0 = arith.constant 0 : i32
    %c0_i32_1 = arith.constant 0 : i32
    return %c0_i32, %c0_i32_0 : i32, i32
  }
  func.func @transform_11(%arg0: i32) -> (i32, i32) {
    %c0_i32 = arith.constant 0 : i32
    %c0_i32_0 = arith.constant 0 : i32
    %c0_i32_1 = arith.constant 0 : i32
    return %c0_i32, %c0_i32_0 : i32, i32
  }
  func.func @transform_12(%arg0: i32) -> (i32, i32) {
    %c0_i32 = arith.constant 0 : i32
    %c0_i32_0 = arith.constant 0 : i32
    %c0_i32_1 = arith.constant 0 : i32
    return %c0_i32, %c0_i32_0 : i32, i32
  }
  func.func @transform_13(%arg0: i32) -> (i32, i32) {
    %c0_i32 = arith.constant 0 : i32
    %c0_i32_0 = arith.constant 0 : i32
    %c0_i32_1 = arith.constant 0 : i32
    return %c0_i32, %c0_i32_0 : i32, i32
  }
  func.func @transform_14(%arg0: i32) -> (i32, i32) {
    %c0_i32 = arith.constant 0 : i32
    %c0_i32_0 = arith.constant 0 : i32
    %c0_i32_1 = arith.constant 0 : i32
    return %c0_i32, %c0_i32_0 : i32, i32
  }
  func.func @transform_15(%arg0: i32) -> (i32, i32) {
    %c0_i32 = arith.constant 0 : i32
    %c0_i32_0 = arith.constant 0 : i32
    %c0_i32_1 = arith.constant 0 : i32
    return %c0_i32, %c0_i32_0 : i32, i32
  }
  func.func @transform_16(%arg0: i32) -> (i32, i32) {
    %c0_i32 = arith.constant 0 : i32
    %c0_i32_0 = arith.constant 0 : i32
    %c0_i32_1 = arith.constant 0 : i32
    return %c0_i32, %c0_i32_0 : i32, i32
  }
  func.func @transform_17(%arg0: i32) -> (i32, i32) {
    %c0_i32 = arith.constant 0 : i32
    %c0_i32_0 = arith.constant 0 : i32
    %c0_i32_1 = arith.constant 0 : i32
    return %c0_i32, %c0_i32_0 : i32, i32
  }
  func.func @transform_18(%arg0: i32) -> (i32, i32) {
    %c0_i32 = arith.constant 0 : i32
    %c0_i32_0 = arith.constant 0 : i32
    return %arg0, %c0_i32 : i32, i32
  }
}

</mosaic_0001>

<bundles_post_ra>
// kernel: tpu_custom_call.1
= control target key start
LH: loop header
LB: loop body
LE: loop exit
PB: predicated region body
PF: predicated region fallthrough
CT: control target
= control target key end

     0   :  { %s4527_s0 = inlined_call_operand.vmem [shape: bf16[64,32], index: 0, kind: input, shape index: {}]   ;;  %s4528_s1 = inlined_call_operand.hbm [shape: bf16[32,292], index: 1, kind: input, shape index: {}]   ;;  %s4529_s2 = inlined_call_operand.hbm [shape: f32[1,292], index: 2, kind: input, shape index: {}]   ;;  %s4530_s3 = inlined_call_operand.hbm [shape: bf16[32,32], index: 3, kind: input, shape index: {}]   ;;  %s4531_s4 = inlined_call_operand.vmem [shape: f32[1,32], index: 4, kind: input, shape index: {}]   ;;  %s4532_s5 = inlined_call_operand.vmem [shape: bf16[32,8], index: 5, kind: input, shape index: {}]   ;;  %s4533_s6 = inlined_call_operand.hbm [shape: f32[1,8], index: 6, kind: input, shape index: {}]   ;;  %s4534_s7 = inlined_call_operand.hbm [shape: f32[1,4], index: 7, kind: input, shape index: {}]   ;;  %s4535_s8 = inlined_call_operand.hbm [shape: f32[1,4], index: 8, kind: input, shape index: {}]   ;;  %s4536_s9 = inlined_call_operand.hbm [shape: bf16[128,128], index: 9, kind: input, shape index: {}]   ;;  %s4537_s10 = inlined_call_operand.hbm [shape: f32[1,128], index: 10, kind: input, shape index: {}]   ;;  %s4538_s11 = inlined_call_operand.vmem [shape: bf16[128,256], index: 11, kind: input, shape index: {}]   ;;  %s4539_s12 = inlined_call_operand.hbm [shape: f32[1,256], index: 12, kind: input, shape index: {}]   ;;  %s4540_s13 = inlined_call_operand.hbm [shape: f32[1,128], index: 13, kind: input, shape index: {}]   ;;  %s4541_s14 = inlined_call_operand.vmem [shape: f32[1,128], index: 14, kind: input, shape index: {}]   ;;  %s4542_s15 = inlined_call_operand.vmem [shape: f32[128,4], index: 15, kind: input, shape index: {}]   ;;  %s4543_s16 = inlined_call_operand.vmem [shape: f32[12,384], index: 16, kind: input, shape index: {}]   ;;  %s4544_s17 = inlined_call_operand.vmem [shape: bf16[132,128], index: 17, kind: input, shape index: {}]   ;;  %s4545_s18 = inlined_call_operand.hbm [shape: bf16[64,128], index: 18, kind: output, shape index: {}]  }
   0x1   :  { %4549 = sst [smem:[#allocation27_spill]] %s4527_s0 }
   0x2   :  { %4550 = sst [smem:[#allocation28_spill]] %s4528_s1 }
   0x3   :  { %4551 = sst [smem:[#allocation29_spill]] %s4529_s2 }
   0x4   :  { %23 = vsyncpa [#allocation3], 0 }
   0x5   :  { %24 = vsyncpa [#allocation6], 0 }
   0x6   :  { %25 = vsyncpa [#allocation9], 0 }
   0x7   :  { %26 = vsyncpa [#allocation12], 0 }
   0x8   :  { %27 = vsyncpa [#allocation15], 0 }
   0x9   :  { %28 = vsyncpa [#allocation18], 0 }
   0xa   :  { %29 = vsyncpa [#allocation4], 0  ;;  %s3433_s27 = smov [#allocation5]   ;;  %s3434_s29 = smov [#allocation8]  }
   0xb   :  { %s50_s28 = sshll.u32 %s3433_s27, 4  ;;  %s76_s30 = sshll.u32 %s3434_s29, 4  ;;  %s51_s28 = int_to_ptr.vmem [resolvable:$true] %s50_s28  ;;  %s77_s30 = int_to_ptr.vmem [resolvable:$true] %s76_s30 }
   0xc   :  { %s4552_s1 = sld [smem:[#allocation29_spill]] }
  0x12   :  { %s3177_s20 = scalar_lea.hbm %s4552_s1, 48 }
  0x13   :  { %p3178_p0 = scmp.ne.s32.totalorder %s4552_s1, %s3177_s20  ;;  %p3181_p1 = scmp.lt.u32.totalorder %s3177_s20, %s4552_s1 }
  0x15   :  { %p3183_p2 = pnand %p3181_p1, %p3178_p0 }
  0x17   :  { %3186 = shalt.err (!%p3183_p2)
}
  0x18   :  { %s3187_s24 = scalar_lea.vmem %s51_s28, 48  ;;  %s3191_s25 = scalar_lea.vmem %s51_s28, 64 }
  0x19   :  { %p3188_p3 = scmp.ne.s32.totalorder %s51_s28, %s3187_s24  ;;  %p3192_p4 = scmp.lt.s32.totalorder %s51_s28, %s51_s28 }
  0x1a   :  { %p3193_p5 = scmp.lt.s32.totalorder %s3191_s25, %s3187_s24 }
  0x1c   :  { %p3194_p6 = por %p3193_p5, %p3192_p4 }
  0x1e   :  { %p3195_p7 = pnand %p3194_p6, %p3188_p3 }
  0x20   :  { %3198 = shalt.err (!%p3195_p7)
}
  0x21   :  { %53 = dma.hbm_to_vmem [thread:$0]  %s4552_s1, 48, %s51_s28, [#allocation6]  }
  0x22   :  { %s3199_s19 = scalar_lea.hbm %s4533_s6, 16 }
  0x23   :  { %p3200_p8 = scmp.ne.s32.totalorder %s4533_s6, %s3199_s19  ;;  %p3203_p9 = scmp.lt.u32.totalorder %s3199_s19, %s4533_s6 }
  0x25   :  { %p3205_p10 = pnand %p3203_p9, %p3200_p8 }
  0x27   :  { %3208 = shalt.err (!%p3205_p10)
}
  0x28   :  { %s3209_s23 = scalar_lea.vmem %s77_s30, 16  ;;  %s3213_s24 = scalar_lea.vmem %s77_s30, 32 }
  0x29   :  { %p3210_p11 = scmp.ne.s32.totalorder %s77_s30, %s3209_s23  ;;  %p3214_p12 = scmp.lt.s32.totalorder %s77_s30, %s77_s30 }
  0x2a   :  { %p3215_p13 = scmp.lt.s32.totalorder %s3213_s24, %s3209_s23 }
  0x2c   :  { %p3216_p0 = por %p3215_p13, %p3214_p12 }
  0x2e   :  { %p3217_p1 = pnand %p3216_p0, %p3210_p11 }
  0x30   :  { %3220 = shalt.err (!%p3217_p1)
}
  0x31   :  { %79 = dma.hbm_to_vmem [thread:$0]  %s4533_s6, 16, %s77_s30, [#allocation9]  }
  0x32   :  { %s3435_s25 = smov [#allocation11]   ;;  %s3436_s27 = smov [#allocation14]  }
  0x33   :  { %s96_s26 = sshll.u32 %s3435_s25, 4  ;;  %s118_s29 = sshll.u32 %s3436_s27, 4  ;;  %s97_s26 = int_to_ptr.vmem [resolvable:$true] %s96_s26  ;;  %s119_s29 = int_to_ptr.vmem [resolvable:$true] %s118_s29 }
  0x34   :  { %s3221_s21 = scalar_lea.hbm %s4535_s8, 16 }
  0x35   :  { %p3222_p2 = scmp.ne.s32.totalorder %s4535_s8, %s3221_s21  ;;  %p3225_p3 = scmp.lt.u32.totalorder %s3221_s21, %s4535_s8 }
  0x37   :  { %p3227_p4 = pnand %p3225_p3, %p3222_p2 }
  0x39   :  { %3230 = shalt.err (!%p3227_p4)
}
  0x3a   :  { %s3231_s6 = scalar_lea.vmem %s97_s26, 16  ;;  %s3235_s30 = scalar_lea.vmem %s97_s26, 32 }
  0x3b   :  { %p3232_p5 = scmp.ne.s32.totalorder %s97_s26, %s3231_s6  ;;  %p3236_p6 = scmp.lt.s32.totalorder %s97_s26, %s97_s26 }
  0x3c   :  { %p3237_p7 = scmp.lt.s32.totalorder %s3235_s30, %s3231_s6 }
  0x3e   :  { %p3238_p8 = por %p3237_p7, %p3236_p6 }
  0x40   :  { %p3239_p9 = pnand %p3238_p8, %p3232_p5 }
  0x42   :  { %3242 = shalt.err (!%p3239_p9)
}
  0x43   :  { %99 = dma.hbm_to_vmem [thread:$0]  %s4535_s8, 16, %s97_s26, [#allocation12]  }
  0x44   :  { %s3243_s27 = scalar_lea.hbm %s4537_s10, 16 }
  0x45   :  { %p3244_p10 = scmp.ne.s32.totalorder %s4537_s10, %s3243_s27  ;;  %p3247_p11 = scmp.lt.u32.totalorder %s3243_s27, %s4537_s10 }
  0x47   :  { %p3249_p12 = pnand %p3247_p11, %p3244_p10 }
  0x49   :  { %3252 = shalt.err (!%p3249_p12)
}
  0x4a   :  { %s3253_s22 = scalar_lea.vmem %s119_s29, 16  ;;  %s3257_s2 = scalar_lea.vmem %s119_s29, 32 }
  0x4b   :  { %p3254_p13 = scmp.ne.s32.totalorder %s119_s29, %s3253_s22  ;;  %p3258_p0 = scmp.lt.s32.totalorder %s119_s29, %s119_s29 }
  0x4c   :  { %p3259_p1 = scmp.lt.s32.totalorder %s3257_s2, %s3253_s22 }
  0x4e   :  { %p3260_p2 = por %p3259_p1, %p3258_p0 }
  0x50   :  { %p3261_p3 = pnand %p3260_p2, %p3254_p13 }
  0x52   :  { %3264 = shalt.err (!%p3261_p3)
}
  0x53   :  { %121 = dma.hbm_to_vmem [thread:$0]  %s4537_s10, 16, %s119_s29, [#allocation15]  }
  0x54   :  { %s3437_s23 = smov [#allocation2]   ;;  %s4553_s28 = sld [smem:[#allocation28_spill]] }
  0x55   :  { %s37_s6 = sshll.u32 %s3437_s23, 4  ;;  %s38_s6 = int_to_ptr.vmem [resolvable:$true] %s37_s6 }
  0x5a   :  { %s3265_s1 = scalar_lea.hbm %s4553_s28, 768 }
  0x5b   :  { %p3266_p4 = scmp.ne.s32.totalorder %s4553_s28, %s3265_s1  ;;  %p3269_p5 = scmp.lt.u32.totalorder %s3265_s1, %s4553_s28 }
  0x5d   :  { %p3271_p6 = pnand %p3269_p5, %p3266_p4 }
  0x5f   :  { %3274 = shalt.err (!%p3271_p6)
}
  0x60   :  { %s3275_s21 = scalar_lea.vmem %s38_s6, 768  ;;  %p3280_p8 = scmp.lt.s32.totalorder %s38_s6, %s38_s6 }
  0x61   :  { %p3276_p7 = scmp.ne.s32.totalorder %s38_s6, %s3275_s21  ;;  %p3281_p9 = scmp.lt.s32.totalorder %s3275_s21, %s3275_s21 }
  0x63   :  { %p3282_p10 = por %p3281_p9, %p3280_p8 }
  0x65   :  { %p3283_p11 = pnand %p3282_p10, %p3276_p7 }
  0x67   :  { %3286 = shalt.err (!%p3283_p11)
}
  0x68   :  { %s3438_s10 = smov 192   ;;  %s3439_s29 = smov 12  }
  0x69   :  { %43 = dma.hbm_to_vmem [thread:$0]  %s4553_s28, 768, %s38_s6, [#allocation3], %s3438_s10, %s3438_s10, %s3439_s29  }
  0x6a   :  { %s3440_s2 = smov [#allocation7]   ;;  %s3287_s30 = scalar_lea.hbm %s4530_s3, 256 }
  0x6b   :  { %s59_s8 = sshll.u32 %s3440_s2, 4  ;;  %p3288_p12 = scmp.ne.s32.totalorder %s4530_s3, %s3287_s30  ;;  %s60_s8 = int_to_ptr.vmem [resolvable:$true] %s59_s8 }
  0x6c   :  { %p3291_p13 = scmp.lt.u32.totalorder %s3287_s30, %s4530_s3 }
  0x6e   :  { %p3293_p0 = pnand %p3291_p13, %p3288_p12 }
  0x70   :  { %3296 = shalt.err (!%p3293_p0)
}
  0x71   :  { %s3297_s0 = scalar_lea.vmem %s60_s8, 256  ;;  %p3302_p2 = scmp.lt.s32.totalorder %s60_s8, %s60_s8 }
  0x72   :  { %p3298_p1 = scmp.ne.s32.totalorder %s60_s8, %s3297_s0  ;;  %p3303_p3 = scmp.lt.s32.totalorder %s3297_s0, %s3297_s0 }
  0x74   :  { %p3304_p4 = por %p3303_p3, %p3302_p2 }
  0x76   :  { %p3305_p5 = pnand %p3304_p4, %p3298_p1 }
  0x78   :  { %3308 = shalt.err (!%p3305_p5)
}
  0x79   :  { %s3441_s6 = smov 64   ;;  %s3442_s28 = smov 4  }
  0x7a   :  { %65 = dma.hbm_to_vmem [thread:$0]  %s4530_s3, 256, %s60_s8, [#allocation6], %s3441_s6, %s3441_s6, %s3442_s28  }
  0x7b   :  { %s3443_s10 = smov [#allocation10]   ;;  %s3444_s20 = smov [#allocation13]  }
  0x7c   :  { %s86_s29 = sshll.u32 %s3443_s10, 4  ;;  %s105_s22 = sshll.u32 %s3444_s20, 4  ;;  %s87_s29 = int_to_ptr.vmem [resolvable:$true] %s86_s29  ;;  %s3624_s22 = int_to_ptr.vmem [resolvable:$true] %s105_s22 }
  0x7d   :  { %s3309_s23 = scalar_lea.hbm %s4534_s7, 16 }
  0x7e   :  { %p3310_p6 = scmp.ne.s32.totalorder %s4534_s7, %s3309_s23  ;;  %p3313_p7 = scmp.lt.u32.totalorder %s3309_s23, %s4534_s7 }
  0x80   :  { %p3315_p8 = pnand %p3313_p7, %p3310_p6 }
  0x82   :  { %3318 = shalt.err (!%p3315_p8)
}
  0x83   :  { %s3319_s3 = scalar_lea.vmem %s87_s29, 16  ;;  %s3323_s8 = scalar_lea.vmem %s87_s29, 32 }
  0x84   :  { %p3320_p9 = scmp.ne.s32.totalorder %s87_s29, %s3319_s3  ;;  %p3324_p10 = scmp.lt.s32.totalorder %s87_s29, %s87_s29 }
  0x85   :  { %p3325_p11 = scmp.lt.s32.totalorder %s3323_s8, %s3319_s3 }
  0x87   :  { %p3326_p12 = por %p3325_p11, %p3324_p10 }
  0x89   :  { %p3327_p13 = pnand %p3326_p12, %p3320_p9 }
  0x8b   :  { %3330 = shalt.err (!%p3327_p13)
}
  0x8c   :  { %89 = dma.hbm_to_vmem [thread:$0]  %s4534_s7, 16, %s87_s29, [#allocation9]  }
  0x8d   :  { %s3331_s10 = scalar_lea.hbm %s4536_s9, 1024 }
  0x8e   :  { %p3332_p0 = scmp.ne.s32.totalorder %s4536_s9, %s3331_s10  ;;  %p3335_p1 = scmp.lt.u32.totalorder %s3331_s10, %s4536_s9 }
  0x90   :  { %p3337_p2 = pnand %p3335_p1, %p3332_p0 }
  0x92   :  { %3340 = shalt.err (!%p3337_p2)
}
  0x93   :  { %s3341_s30 = scalar_lea.vmem %s3624_s22, 1024  ;;  %p3346_p4 = scmp.lt.s32.totalorder %s3624_s22, %s3624_s22 }
  0x94   :  { %p3342_p3 = scmp.ne.s32.totalorder %s3624_s22, %s3341_s30  ;;  %p3347_p5 = scmp.lt.s32.totalorder %s3341_s30, %s3341_s30 }
  0x96   :  { %p3348_p6 = por %p3347_p5, %p3346_p4 }
  0x98   :  { %p3349_p7 = pnand %p3348_p6, %p3342_p3 }
  0x9a   :  { %3352 = shalt.err (!%p3349_p7)
}
  0x9b   :  { %111 = dma.hbm_to_vmem [thread:$0]  %s4536_s9, 1024, %s3624_s22, [#allocation12], %s3441_s6, %s3441_s6, %s3442_s28  }
  0x9c   :  { %s3445_s24 = smov [#allocation16]   ;;  %s3446_s25 = smov [#allocation17]  }
  0x9d   :  { %s130_s1 = sshll.u32 %s3445_s24, 4  ;;  %s140_s3 = sshll.u32 %s3446_s25, 4  ;;  %s131_s1 = int_to_ptr.vmem [resolvable:$true] %s130_s1  ;;  %s141_s3 = int_to_ptr.vmem [resolvable:$true] %s140_s3 }
  0x9e   :  { %s3353_s0 = scalar_lea.hbm %s4539_s12, 32 }
  0x9f   :  { %p3354_p8 = scmp.ne.s32.totalorder %s4539_s12, %s3353_s0  ;;  %p3357_p9 = scmp.lt.u32.totalorder %s3353_s0, %s4539_s12 }
  0xa1   :  { %p3359_p10 = pnand %p3357_p9, %p3354_p8 }
  0xa3   :  { %3362 = shalt.err (!%p3359_p10)
}
  0xa4   :  { %s3363_s9 = scalar_lea.vmem %s131_s1, 32  ;;  %p3368_p12 = scmp.lt.s32.totalorder %s131_s1, %s131_s1 }
  0xa5   :  { %p3364_p11 = scmp.ne.s32.totalorder %s131_s1, %s3363_s9  ;;  %p3369_p13 = scmp.lt.s32.totalorder %s3363_s9, %s3363_s9 }
  0xa7   :  { %p3370_p0 = por %p3369_p13, %p3368_p12 }
  0xa9   :  { %p3371_p1 = pnand %p3370_p0, %p3364_p11 }
  0xab   :  { %3374 = shalt.err (!%p3371_p1)
}
  0xac   :  { %133 = dma.hbm_to_vmem [thread:$0]  %s4539_s12, 32, %s131_s1, [#allocation15]  }
  0xad   :  { %s3375_s30 = scalar_lea.hbm %s4540_s13, 16 }
  0xae   :  { %p3376_p2 = scmp.ne.s32.totalorder %s4540_s13, %s3375_s30  ;;  %p3379_p3 = scmp.lt.u32.totalorder %s3375_s30, %s4540_s13 }
  0xb0   :  { %p3381_p4 = pnand %p3379_p3, %p3376_p2 }
  0xb2   :  { %3384 = shalt.err (!%p3381_p4)
}
  0xb3   :  { %s3385_s8 = scalar_lea.vmem %s141_s3, 16  ;;  %s3389_s27 = scalar_lea.vmem %s141_s3, 32 }
  0xb4   :  { %p3386_p5 = scmp.ne.s32.totalorder %s141_s3, %s3385_s8  ;;  %p3390_p6 = scmp.lt.s32.totalorder %s141_s3, %s141_s3 }
  0xb5   :  { %p3391_p7 = scmp.lt.s32.totalorder %s3389_s27, %s3385_s8 }
  0xb7   :  { %p3392_p8 = por %p3391_p7, %p3390_p6 }
  0xb9   :  { %p3393_p9 = pnand %p3392_p8, %p3386_p5 }
  0xbb   :  { %3396 = shalt.err (!%p3393_p9)
}
  0xbc   :  { %143 = dma.hbm_to_vmem [thread:$0]  %s4540_s13, 16, %s141_s3, [#allocation18]  }
  0xbd   :  { %3419 = dma.done.wait [#allocation3], 768  }
  0xbe   :  { %3420 = vsyncadd [#allocation3], 4294966528 }
  0xbf   :  { %3421 = dma.done.wait [#allocation6], 304  }
  0xc0   :  { %3422 = vsyncadd [#allocation6], 4294966992 }
  0xc1   :  { %3423 = dma.done.wait [#allocation9], 32  }
  0xc2   :  { %3424 = vsyncadd [#allocation9], 4294967264 }
  0xc3   :  { %3425 = dma.done.wait [#allocation12], 1040  }
  0xc4   :  { %3426 = vsyncadd [#allocation12], 4294966256 }
  0xc5   :  { %3427 = dma.done.wait [#allocation15], 48  }
  0xc6   :  { %3428 = vsyncadd [#allocation15], 4294967248 }
  0xc7   :  { %3429 = dma.done.wait [#allocation18], 16  }
  0xc8   :  { %3430 = vsyncadd [#allocation18], 4294967280  ;;  %v3447_v0 = vmov 0   ;;  %v2960_v1 = vld [vmem:[#allocation2 + $0x4] ss:$12 sps:$4 sm:$0xff]   ;;  %s4554_s0 = sld [smem:[#allocation27_spill]]  ;;  %v201_v15 = vlaneseq }
  0xc9   :  { %313 = vmatprep.mubr.bf16.mxu0 %v3447_v0  ;;  %v2962_v2 = vld [vmem:[#allocation2] ss:$12 sps:$4 sm:$0xff]   ;;  %281 = vmatprep.subr.bf16.mxu0 %v2960_v1  ;;  %v2963_v3 = vld [vmem:[#allocation2 + $0x1c] ss:$12 sps:$4 sm:$0xff]   ;;  %v2965_v4 = vld [vmem:[#allocation2 + $0x18] ss:$12 sps:$4 sm:$0xff]  }
  0xca   :  { %282 = vmatpush1.bf16.msra.mxu0 %v2962_v2  ;;  %v2967_v5 = vld [vmem:[#allocation2 + $0x8] ss:$12 sps:$4 sm:$0xff]   ;;  %vm268_vm0 = vcmask 261120   ;;  %v2970_v7 = vld [vmem:[#allocation2 + $0x20] ss:$12 sps:$4 sm:$0xff]   ;;  %v3712_v16 = vshrl.u32 %v201_v15, 7 }
  0xcb   :  { %283 = vmatprep.subr.bf16.mxu0 %v2963_v3  ;;  %v2972_v11 = vld [vmem:[#allocation7] sm:$0xff]   ;;  %v2973_v12 = vld [vmem:[#allocation7 + $0x8] sm:$0xff]   ;;  %v3706_v13 = vld [vmem:[#allocation13] sm:$0xff]   ;;  %s3449_s22 = smov 96  }
  0xcc   :  { %2711 = vmatprep.subr.bf16.mxu1 %v2972_v11  ;;  %v2982_v14 = vld [vmem:[%s4532_s5] sm:$0xff]   ;;  %v207_v17 = vsub.s32 1, %v3712_v16  ;;  %v3715_v18 = vld [vmem:[#allocation5] sm:$0x7]  ;;  %v211_v59 = vsub.s32 2, %v3712_v16 }
  0xcd   :  { %2712 = vmatpush3.bf16.msra.mxu1 %v2972_v11 }
  0xce   :  { %v2966_v6 = vld [vmem:[%s4554_s0] sm:$0xff]   ;;  %284 = vmatpush1.bf16.msra.mxu0 %v2965_v4  ;;  %v2968_v8 = vld [vmem:[%s4554_s0 + $0x8] sm:$0xff]   ;;  %v2969_v9 = vld [vmem:[%s4554_s0 + $0x10] sm:$0xff]   ;;  %2713 = vmatprep.subr.bf16.mxu1 %v2973_v12  ;;  %v208_v19 = vrot.slane %v3715_v18, %v207_v17 }
  0xcf   :  { %2699 = vmatprep.subr.bf16.mxu0 %v2967_v5  ;;  %v2971_v10 = vld [vmem:[%s4554_s0 + $0x18] sm:$0xff]  }
  0xd1   :  { %2457 = vmatmul.mubr.msk.bf16.vlgmr.msra.gmra.mrb[0].mxu0 %vm268_vm0, %v2966_v6  ;;  %2714 = vmatpush3.bf16.msra.mxu1 %v2973_v12 }
  0xd2   :  { %2700 = vmatpush3.bf16.msra.mxu0 %v2967_v5  ;;  %323 = vmatprep.mubr.bf16.mxu0 %v3447_v0 }
  0xd3   :  { %2701 = vmatprep.subr.bf16.mxu0 %v2970_v7  ;;  %2735 = vmatprep.subr.bf16.mxu1 %v3706_v13 }
  0xd6   :  { %2702 = vmatpush3.bf16.msra.mxu0 %v2970_v7 }
  0xd7   :  { %2723 = vmatprep.subr.bf16.mxu0 %v2982_v14 }
  0xd9   :  { %2458 = vmatmul.mubr.msk.bf16.gmra.mrb[4].mxu0 %vm268_vm0, %v2968_v8 }
  0xda   :  { %333 = vmatprep.mubr.bf16.mxu0 %v3447_v0 }
  0xe1   :  { %2459 = vmatmul.mubr.msk.bf16.gmra.mrb[8].mxu0 %vm268_vm0, %v2969_v9 }
  0xe2   :  { %343 = vmatprep.mubr.bf16.mxu0 %v3447_v0 }
  0xe9   :  { %2460 = vmatmul.mubr.msk.bf16.gmra.mrb[12].mxu0 %vm268_vm0, %v2971_v10 }
  0xea   :  { %2703 = vmatprep.mubr.msk.bf16.mxu0 %vm268_vm0, %v2966_v6  ;;  %v212_v6 = vrot.slane %v3715_v18, %v211_v59 }
  0xf1   :  { %2704 = vmatmul.mubr.msk.bf16.vlgmr.msra.gmra.mrb[16].mxu0 %vm268_vm0, %v2968_v8 }
  0xf2   :  { %2707 = vmatprep.mubr.msk.bf16.mxu0 %vm268_vm0, %v2969_v9  ;;  %2724 = vmatpush3.bf16.msra.mxu0 %v2982_v14 }
  0xf9   :  { %2708 = vmatmul.mubr.msk.bf16.gmra.mrb[20].mxu0 %vm268_vm0, %v2971_v10 }
 0x1a4   :  { %v3720_v20 = vpop.f32.mrb[0].mxu0 }
 0x1a5   :  { %v317_v21 = vpop.f32.mrb[1].mxu0 }
 0x1a6   :  { %v318_v22 = vadd.f32 %v317_v21, %v208_v19  ;;  %v3722_v23 = vpop.f32.mrb[2].mxu0 }
 0x1a7   :  { %v321_v24 = vpop.f32.mrb[3].mxu0 }
 0x1a8   :  { %v427_v25 = vmin.f32 %v318_v22, 0.0  ;;  %v322_v26 = vadd.f32 %v321_v24, %v208_v19  ;;  %vm419_vm1 = vcmp.gt.f32.partialorder %v318_v22, 0.0 }
 0x1aa   :  { %v435_v27 = vmul.f32 1.442695, %v427_v25  ;;  %v428_v28 = vmin.f32 %v322_v26, 0.0  ;;  %vm420_vm2 = vcmp.gt.f32.partialorder %v322_v26, 0.0 }
 0x1ac   :  { %3017 = vpow2.f32 %v435_v27  ;;  %v437_v29 = vmul.f32 1.442695, %v428_v28  ;;  %v3724_v30 = vpop.f32.mrb[4].mxu0 }
 0x1ad   :  { %v327_v31 = vpop.f32.mrb[5].mxu0 }
 0x1ae   :  { %3019 = vpow2.f32 %v437_v29  ;;  %v328_v32 = vadd.f32 %v327_v31, %v208_v19  ;;  %v3726_v33 = vpop.f32.mrb[6].mxu0 }
 0x1af   :  { %v331_v34 = vpop.f32.mrb[7].mxu0 }
 0x1b0   :  { %v429_v35 = vmin.f32 %v328_v32, 0.0  ;;  %v332_v36 = vadd.f32 %v331_v34, %v208_v19  ;;  %vm421_vm3 = vcmp.gt.f32.partialorder %v328_v32, 0.0 }
 0x1b2   :  { %v439_v37 = vmul.f32 1.442695, %v429_v35  ;;  %v430_v38 = vmin.f32 %v332_v36, 0.0  ;;  %vm422_vm4 = vcmp.gt.f32.partialorder %v332_v36, 0.0 }
 0x1b4   :  { %3021 = vpow2.f32 %v439_v37  ;;  %v441_v39 = vmul.f32 1.442695, %v430_v38  ;;  %v3728_v40 = vpop.f32.mrb[8].mxu0 }
 0x1b5   :  { %v337_v41 = vpop.f32.mrb[9].mxu0 }
 0x1b6   :  { %v3018_v42 = vpop.eup %3017  ;;  %3023 = vpow2.f32 %v441_v39  ;;  %v3730_v43 = vadd.f32 %v337_v41, %v208_v19  ;;  %v3732_v44 = vpop.f32.mrb[10].mxu0 }
 0x1b7   :  { %v2465_v45 = vadd.f32 -1.0, %v3018_v42  ;;  %v341_v46 = vpop.f32.mrb[11].mxu0 }
 0x1b8   :  { %v3020_v47 = vpop.eup %3019  ;;  %v431_v48 = vmin.f32 %v3730_v43, 0.0  ;;  %v342_v49 = vadd.f32 %v341_v46, %v208_v19  ;;  %vm423_vm5 = vcmp.gt.f32.partialorder %v3730_v43, 0.0 }
 0x1b9   :  { %v2466_v50 = vadd.f32 -1.0, %v3020_v47  ;;  %v3735_v53 = vsel %vm419_vm1, %v318_v22, %v2465_v45 }
 0x1ba   :  { %v443_v51 = vmul.f32 1.442695, %v431_v48  ;;  %v432_v52 = vmin.f32 %v342_v49, 0.0  ;;  %vm424_vm6 = vcmp.gt.f32.partialorder %v342_v49, 0.0 }
 0x1bb   :  { %v3737_v54 = vsel %vm420_vm2, %v322_v26, %v2466_v50  ;;  %vm1930_vm2 = vcmask 1043456  }
 0x1bc   :  { %3025 = vpow2.f32 %v443_v51  ;;  %v445_v55 = vmul.f32 1.442695, %v432_v52  ;;  %v3739_v56 = vpop.f32.mrb[12].mxu0  ;;  %v1171_v57 = vpack.c.bf16 %v3737_v54, %v3735_v53  ;;  %v2983_v53 = vld [vmem:[%s4532_s5 + $0x8] sm:$0xff]  }
 0x1bd   :  { %v347_v58 = vpop.f32.mrb[13].mxu0  ;;  %2725 = vmatprep.subr.bf16.mxu0 %v2983_v53  ;;  %v2986_v54 = vld [vmem:[%s4538_s11 + $0x4] ss:$8 sps:$4 sm:$0xff]  }
 0x1be   :  { %v3022_v60 = vpop.eup %3021  ;;  %3027 = vpow2.f32 %v445_v55  ;;  %v3744_v61 = vadd.f32 %v347_v58, %v208_v19  ;;  %v3746_v62 = vpop.f32.mrb[14].mxu0  ;;  %2726 = vmatpush3.bf16.msra.mxu0 %v2983_v53 }
 0x1bf   :  { %v2467_v63 = vadd.f32 -1.0, %v3022_v60  ;;  %v351_v1 = vpop.f32.mrb[15].mxu0  ;;  %1423 = vmatprep.subr.bf16.mxu0 %v2986_v54 }
 0x1c0   :  { %v3024_v2 = vpop.eup %3023  ;;  %v433_v3 = vmin.f32 %v3744_v61, 0.0  ;;  %v3749_v4 = vadd.f32 %v351_v1, %v208_v19  ;;  %vm425_vm7 = vcmp.gt.f32.partialorder %v3744_v61, 0.0 }
 0x1c1   :  { %v2468_v5 = vadd.f32 -1.0, %v3024_v2  ;;  %v3753_v9 = vsel %vm421_vm3, %v328_v32, %v2467_v63  ;;  %vm3450_vm3 = vmmov 1  }
 0x1c2   :  { %v447_v7 = vmul.f32 1.442695, %v433_v3  ;;  %v434_v8 = vmin.f32 %v3749_v4, 0.0  ;;  %vm426_vm8 = vcmp.gt.f32.partialorder %v3749_v4, 0.0 }
 0x1c3   :  { %v3755_v10 = vsel %vm422_vm4, %v332_v36, %v2468_v5  ;;  %vm2928_vm4 = vmpackc.low %vm1930_vm2, %vm3450_vm3 }
 0x1c4   :  { %v1172_v11 = vpack.c.bf16 %v3755_v10, %v3753_v9  ;;  %3029 = vpow2.f32 %v447_v7  ;;  %v449_v12 = vmul.f32 1.442695, %v434_v8  ;;  %v2705_v14 = vpop.f32.mrb[16].mxu0  ;;  %v2481_v9 = vld [vmem:[%s4531_s4] ss:$0 sm:$0xff] }
 0x1c5   :  { %v3759_v15 = vadd.f32 %v2705_v14, %v212_v6  ;;  %v388_v19 = vpop.f32.mrb[17].mxu0 }
 0x1c6   :  { %v3026_v21 = vpop.eup %3025  ;;  %3031 = vpow2.f32 %v449_v12  ;;  %v3761_v22 = vadd.f32 %v388_v19, %v212_v6  ;;  %v2706_v24 = vpop.f32.mrb[18].mxu0 }
 0x1c7   :  { %v2469_v25 = vadd.f32 -1.0, %v3026_v21  ;;  %v477_v26 = vmin.f32 %v3759_v15, 0.0  ;;  %v3764_v27 = vadd.f32 %v2706_v24, %v212_v6  ;;  %v391_v28 = vpop.f32.mrb[19].mxu0  ;;  %vm469_vm12 = vcmp.gt.f32.partialorder %v3759_v15, 0.0 }
 0x1c8   :  { %v3028_v29 = vpop.eup %3027  ;;  %v475_v31 = vmin.f32 %v3761_v22, 0.0  ;;  %v3767_v32 = vadd.f32 %v391_v28, %v212_v6  ;;  %vm467_vm10 = vcmp.gt.f32.partialorder %v3761_v22, 0.0 }
 0x1c9   :  { %v2470_v34 = vadd.f32 -1.0, %v3028_v29  ;;  %v487_v35 = vmul.f32 1.442695, %v477_v26  ;;  %v478_v36 = vmin.f32 %v3764_v27, 0.0  ;;  %v3773_v41 = vsel %vm423_vm5, %v3730_v43, %v2469_v25 }
 0x1ca   :  { %v483_v37 = vmul.f32 1.442695, %v475_v31  ;;  %v476_v38 = vmin.f32 %v3767_v32, 0.0  ;;  %vm470_vm9 = vcmp.gt.f32.partialorder %v3764_v27, 0.0  ;;  %vm468_vm11 = vcmp.gt.f32.partialorder %v3767_v32, 0.0 }
 0x1cb   :  { %3033 = vpow2.f32 %v487_v35  ;;  %v489_v39 = vmul.f32 1.442695, %v478_v36  ;;  %v3775_v42 = vsel %vm424_vm6, %v342_v49, %v2470_v34  ;;  %vm1890_vm5 = vcmask 64512  }
 0x1cc   :  { %3035 = vpow2.f32 %v483_v37  ;;  %v485_v45 = vmul.f32 1.442695, %v476_v38  ;;  %v2709_v46 = vpop.f32.mrb[20].mxu0  ;;  %v1173_v47 = vpack.c.bf16 %v3775_v42, %v3773_v41  ;;  %vm1905_vm6 = vcmask 97280  }
 0x1cd   :  { %3037 = vpow2.f32 %v489_v39  ;;  %v3779_v48 = vadd.f32 %v2709_v46, %v212_v6  ;;  %v404_v50 = vpop.f32.mrb[21].mxu0  ;;  %v2975_v46 = vld [vmem:[#allocation13 + $0x8] sm:$0xff]  }
 0x1ce   :  { %v3030_v51 = vpop.eup %3029  ;;  %3039 = vpow2.f32 %v485_v45  ;;  %v3781_v52 = vadd.f32 %v404_v50, %v212_v6  ;;  %v2710_v55 = vpop.f32.mrb[22].mxu0 }
 0x1cf   :  { %v2471_v58 = vadd.f32 -1.0, %v3030_v51  ;;  %v481_v43 = vmin.f32 %v3779_v48, 0.0  ;;  %v3784_v49 = vadd.f32 %v2710_v55, %v212_v6  ;;  %v407_v59 = vpop.f32.mrb[23].mxu0  ;;  %vm473_vm13 = vcmp.gt.f32.partialorder %v3779_v48, 0.0 }
 0x1d0   :  { %v3032_v60 = vpop.eup %3031  ;;  %v479_v63 = vmin.f32 %v3781_v52, 0.0  ;;  %v3787_v1 = vadd.f32 %v407_v59, %v212_v6  ;;  %vm471_vm14 = vcmp.gt.f32.partialorder %v3781_v52, 0.0 }
 0x1d1   :  { %v2472_v2 = vadd.f32 -1.0, %v3032_v60  ;;  %v495_v3 = vmul.f32 1.442695, %v481_v43  ;;  %v482_v5 = vmin.f32 %v3784_v49, 0.0  ;;  %v3794_v14 = vsel %vm425_vm7, %v3744_v61, %v2471_v58 }
 0x1d2   :  { %v491_v7 = vmul.f32 1.442695, %v479_v63  ;;  %v480_v8 = vmin.f32 %v3787_v1, 0.0  ;;  %vm474_vm15 = vcmp.gt.f32.partialorder %v3784_v49, 0.0  ;;  %vm472_vm1 = vcmp.gt.f32.partialorder %v3787_v1, 0.0 }
 0x1d3   :  { %3041 = vpow2.f32 %v495_v3  ;;  %v497_v12 = vmul.f32 1.442695, %v482_v5  ;;  %v3797_v19 = vsel %vm426_vm8, %v3749_v4, %v2472_v2  ;;  %v2976_v3 = vld [vmem:[#allocation13 + $0x10] sm:$0xff]   ;;  %vm2316_vm7 = vcmask 1041408  }
 0x1d4   :  { %3043 = vpow2.f32 %v491_v7  ;;  %v493_v6 = vmul.f32 1.442695, %v480_v8  ;;  %v1174_v21 = vpack.c.bf16 %v3797_v19, %v3794_v14 }
 0x1d5   :  { %v3034_v24 = vpop.eup %3033  ;;  %3045 = vpow2.f32 %v497_v12 }
 0x1d6   :  { %v3036_v25 = vpop.eup %3035  ;;  %3047 = vpow2.f32 %v493_v6  ;;  %v2475_v31 = vadd.f32 -1.0, %v3034_v24  ;;  %v2977_v6 = vld [vmem:[#allocation13 + $0x18] sm:$0xff]   ;;  %v2979_v24 = vld [vmem:[#allocation13 + $0x28] sm:$0xff]  }
 0x1d7   :  { %v3038_v26 = vpop.eup %3037  ;;  %v2473_v28 = vadd.f32 -1.0, %v3036_v25  ;;  %v2980_v25 = vld [vmem:[#allocation13 + $0x30] sm:$0xff]  }
 0x1d8   :  { %v3040_v29 = vpop.eup %3039  ;;  %v2476_v34 = vadd.f32 -1.0, %v3038_v26  ;;  %v509_v38 = vsel %vm469_vm12, %v3759_v15, %v2475_v31  ;;  %v2981_v26 = vld [vmem:[#allocation13 + $0x38] sm:$0xff]   ;;  %v2989_v31 = vld [vmem:[%s4538_s11 + $0x14] ss:$8 sps:$4 sm:$0xff]  }
 0x1d9   :  { %v2474_v61 = vadd.f32 -1.0, %v3040_v29  ;;  %v507_v35 = vsel %vm467_vm10, %v3761_v22, %v2473_v28  ;;  %v2984_v29 = vld [vmem:[%s4538_s11] ss:$8 sps:$4 sm:$0xff]  }
 0x1da   :  { %v510_v4 = vsel %vm470_vm9, %v3764_v27, %v2476_v34 }
 0x1db   :  { %v508_v36 = vsel %vm468_vm11, %v3767_v32, %v2474_v61  ;;  %v516_v45 = vpack.c.bf16 %v510_v4, %v509_v38 }
 0x1dc   :  { %v515_v37 = vpack.c.bf16 %v508_v36, %v507_v35 }
 0x1dd   :  { %v3042_v39 = vpop.eup %3041 }
 0x1de   :  { %v3044_v50 = vpop.eup %3043  ;;  %v2479_v51 = vadd.f32 -1.0, %v3042_v39  ;;  %2715 = vmatprep.mubr.msk.bf16.mxu1 %vm268_vm0, %v515_v37  ;;  %v2987_v37 = vld [vmem:[%s4538_s11 + $0x10] ss:$8 sps:$4 sm:$0xff]  }
 0x1df   :  { %v3046_v55 = vpop.eup %3045  ;;  %v2477_v58 = vadd.f32 -1.0, %v3044_v50  ;;  %2716 = vmatmul.mubr.msk.bf16.vlgmr.msra.gmra.mrb[0].mxu1 %vm268_vm0, %v516_v45  ;;  %v2992_v45 = vld [vmem:[%s4538_s11 + $0x24] ss:$8 sps:$4 sm:$0xff]  }
 0x1e0   :  { %v3048_v43 = vpop.eup %3047  ;;  %v2480_v59 = vadd.f32 -1.0, %v3046_v55  ;;  %2736 = vmatpush3.bf16.msra.mxu1 %v3706_v13  ;;  %v513_v60 = vsel %vm473_vm13, %v3779_v48, %v2479_v51  ;;  %v2978_v13 = vld [vmem:[#allocation13 + $0x20] sm:$0xff]  }
 0x1e1   :  { %v2478_v63 = vadd.f32 -1.0, %v3048_v43  ;;  %2737 = vmatprep.subr.bf16.mxu1 %v2975_v46  ;;  %v511_v2 = vsel %vm471_vm14, %v3781_v52, %v2477_v58  ;;  %v2990_v55 = vld [vmem:[%s4538_s11 + $0x20] ss:$8 sps:$4 sm:$0xff]   ;;  %v2995_v58 = vld [vmem:[%s4538_s11 + $0x34] ss:$8 sps:$4 sm:$0xff]  }
 0x1e2   :  { %v514_v5 = vsel %vm474_vm15, %v3784_v49, %v2480_v59  ;;  %v2993_v43 = vld [vmem:[%s4538_s11 + $0x30] ss:$8 sps:$4 sm:$0xff]   ;;  %v2998_v59 = vld [vmem:[%s4538_s11 + $0x44] ss:$8 sps:$4 sm:$0xff]  }
 0x1e3   :  { %v512_v7 = vsel %vm472_vm1, %v3787_v1, %v2478_v63  ;;  %v518_v8 = vpack.c.bf16 %v514_v5, %v513_v60  ;;  %v2996_v60 = vld [vmem:[%s4538_s11 + $0x40] ss:$8 sps:$4 sm:$0xff]   ;;  %v3001_v63 = vld [vmem:[%s4538_s11 + $0x54] ss:$8 sps:$4 sm:$0xff]  }
 0x1e4   :  { %2738 = vmatpush3.bf16.msra.mxu1 %v2975_v46  ;;  %v517_v12 = vpack.c.bf16 %v512_v7, %v511_v2  ;;  %v2999_v2 = vld [vmem:[%s4538_s11 + $0x50] ss:$8 sps:$4 sm:$0xff]   ;;  %v3002_v5 = vld [vmem:[%s4538_s11 + $0x60] ss:$8 sps:$4 sm:$0xff]   ;;  %v3007_v7 = vld [vmem:[%s4538_s11 + $0x74] ss:$8 sps:$4 sm:$0xff]  }
 0x1e5   :  { %2739 = vmatprep.subr.bf16.mxu1 %v2976_v3 }
 0x1e6   :  { %2719 = vmatprep.mubr.msk.bf16.mxu1 %vm268_vm0, %v517_v12  ;;  %v2505_v12 = vld [vmem:[#allocation14] ss:$0 sm:$0xff] }
 0x1e7   :  { %2720 = vmatmul.mubr.msk.bf16.gmra.mrb[4].mxu1 %vm268_vm0, %v518_v8 }
 0x1e8   :  { %2740 = vmatpush3.bf16.msra.mxu1 %v2976_v3  ;;  %2751 = vmatprep.mubr.bf16.mxu1 %v1171_v57  ;;  %v3004_v3 = vld [vmem:[%s4538_s11 + $0x64] ss:$8 sps:$4 sm:$0xff]  }
 0x1e9   :  { %2741 = vmatprep.subr.bf16.mxu1 %v2977_v6 }
 0x1ec   :  { %2742 = vmatpush3.bf16.msra.mxu1 %v2977_v6 }
 0x1ed   :  { %2743 = vmatprep.subr.bf16.mxu1 %v2978_v13 }
 0x1f0   :  { %2744 = vmatpush3.bf16.msra.mxu1 %v2978_v13 }
 0x1f1   :  { %2745 = vmatprep.subr.bf16.mxu1 %v2979_v24 }
 0x1f4   :  { %2746 = vmatpush3.bf16.msra.mxu1 %v2979_v24  ;;  %v3005_v24 = vld [vmem:[%s4538_s11 + $0x70] ss:$8 sps:$4 sm:$0xff]  }
 0x1f5   :  { %2747 = vmatprep.subr.bf16.mxu1 %v2980_v25 }
 0x1f8   :  { %2748 = vmatpush3.bf16.msra.mxu1 %v2980_v25 }
 0x1f9   :  { %2749 = vmatprep.subr.bf16.mxu1 %v2981_v26 }
 0x1fc   :  { %2750 = vmatpush3.bf16.msra.mxu1 %v2981_v26 }
 0x1ff   :  { %2752 = vmatmul.mubr.bf16.vlgmr.msra.gmra.mrb[8].mxu1 %v1172_v11 }
 0x200   :  { %2755 = vmatprep.mubr.bf16.mxu1 %v1173_v47 }
 0x207   :  { %2756 = vmatmul.mubr.bf16.gmra.mrb[12].mxu1 %v1174_v21 }
 0x2b2   :  { %v2717_v57 = vpop.f32.mrb[0].mxu1 }
 0x2b3   :  { %v588_v10 = vpop.f32.mrb[1].mxu1  ;;  %v597_v41 = vadd.f32 %v2717_v57, %v2481_v9 }
 0x2b4   :  { %v2718_v11 = vpop.f32.mrb[2].mxu1  ;;  %v589_v14 = vadd.f32 %v2481_v9, %v588_v10 }
 0x2b5   :  { %v600_v42 = vadd.f32 %v2718_v11, %v2481_v9  ;;  %v591_v47 = vpop.f32.mrb[3].mxu1 }
 0x2b6   :  { %v592_v19 = vadd.f32 %v2481_v9, %v591_v47 }
 0x2b7   :  { %v620_v21 = vpack.c.bf16 %v600_v42, %v597_v41 }
 0x2b8   :  { %v619_v28 = vpack.c.bf16 %v592_v19, %v589_v14 }
 0x2ba   :  { %v2721_v34 = vpop.f32.mrb[4].mxu1  ;;  %2727 = vmatprep.mubr.msk.bf16.mxu0 %vm268_vm0, %v619_v28 }
 0x2bb   :  { %v613_v61 = vadd.f32 %v2721_v34, %v2481_v9  ;;  %v604_v4 = vpop.f32.mrb[5].mxu1  ;;  %2728 = vmatmul.mubr.msk.bf16.vlgmr.msra.gmra.mrb[24].mxu0 %vm268_vm0, %v620_v21  ;;  %v1560_v34 = vld [vmem:[%s4542_s15] sm:$0xff] }
 0x2bc   :  { %v605_v35 = vadd.f32 %v2481_v9, %v604_v4  ;;  %1424 = vmatpush1.bf16.msra.mxu0 %v2984_v29  ;;  %v2722_v36 = vpop.f32.mrb[6].mxu1 }
 0x2bd   :  { %v616_v38 = vadd.f32 %v2722_v36, %v2481_v9  ;;  %v607_v39 = vpop.f32.mrb[7].mxu1  ;;  %1425 = vmatprep.subr.bf16.mxu0 %v2989_v31  ;;  %v1563_v36 = vld [vmem:[%s4542_s15 + $0x18] sm:$0xff] }
 0x2be   :  { %v608_v46 = vadd.f32 %v2481_v9, %v607_v39  ;;  %v1565_v39 = vld [vmem:[%s4542_s15 + $0x28] sm:$0xff] }
 0x2bf   :  { %v622_v50 = vpack.c.bf16 %v616_v38, %v613_v61  ;;  %v1561_v61 = vld [vmem:[%s4542_s15 + $0x8] sm:$0xff]  ;;  %v1564_v38 = vld [vmem:[%s4542_s15 + $0x20] sm:$0xff] }
 0x2c0   :  { %v621_v51 = vpack.c.bf16 %v608_v46, %v605_v35  ;;  %1426 = vmatpush1.bf16.msra.mxu0 %v2987_v37  ;;  %v2863_v4 = vpack.c.bf16 %v1561_v61, %v1560_v34  ;;  %v1562_v35 = vld [vmem:[%s4542_s15 + $0x10] sm:$0xff] }
 0x2c1   :  { %1427 = vmatprep.subr.bf16.mxu0 %v2992_v45  ;;  %v2867_v37 = vpack.c.bf16 %v1563_v36, %v1562_v35  ;;  %v2871_v45 = vpack.c.bf16 %v1565_v39, %v1564_v38  ;;  %v1566_v46 = vld [vmem:[%s4542_s15 + $0x30] sm:$0xff] }
 0x2c2   :  { %2731 = vmatprep.mubr.msk.bf16.mxu0 %vm268_vm0, %v621_v51  ;;  %2864 = vmatprep.subr.bf16.mxu1 %v2863_v4 }
 0x2c3   :  { %2732 = vmatmul.mubr.msk.bf16.gmra.mrb[28].mxu0 %vm268_vm0, %v622_v50  ;;  %2866 = vmatpush3.bf16.msra.mxu1 %v2863_v4  ;;  %v1567_v50 = vld [vmem:[%s4542_s15 + $0x38] sm:$0xff]  ;;  %vm883_vm0 = vcmask 31744  }
 0x2c4   :  { %1428 = vmatpush1.bf16.msra.mxu0 %v2990_v55  ;;  %1455 = vmatprep.mubr.bf16.mxu0 %v3447_v0  ;;  %v2875_v51 = vpack.c.bf16 %v1567_v50, %v1566_v46  ;;  %v1568_v55 = vld [vmem:[%s4542_s15 + $0x40] sm:$0xff] }
 0x2c5   :  { %1429 = vmatprep.subr.bf16.mxu0 %v2995_v58  ;;  %2868 = vmatprep.subr.bf16.mxu1 %v2867_v37  ;;  %v1569_v58 = vld [vmem:[%s4542_s15 + $0x48] sm:$0xff] }
 0x2c7   :  { %2870 = vmatpush3.bf16.msra.mxu1 %v2867_v37 }
 0x2c8   :  { %1430 = vmatpush1.bf16.msra.mxu0 %v2993_v43  ;;  %2872 = vmatprep.subr.bf16.mxu1 %v2871_v45  ;;  %v2879_v43 = vpack.c.bf16 %v1569_v58, %v1568_v55 }
 0x2c9   :  { %1431 = vmatprep.subr.bf16.mxu0 %v2998_v59  ;;  %v1570_v59 = vld [vmem:[%s4542_s15 + $0x50] sm:$0xff] }
 0x2cb   :  { %2874 = vmatpush3.bf16.msra.mxu1 %v2871_v45 }
 0x2cc   :  { %1432 = vmatpush1.bf16.msra.mxu0 %v2996_v60  ;;  %2876 = vmatprep.subr.bf16.mxu1 %v2875_v51  ;;  %v1571_v60 = vld [vmem:[%s4542_s15 + $0x58] sm:$0xff] }
 0x2cd   :  { %1433 = vmatprep.subr.bf16.mxu0 %v3001_v63  ;;  %v2883_v63 = vpack.c.bf16 %v1571_v60, %v1570_v59 }
 0x2cf   :  { %2878 = vmatpush3.bf16.msra.mxu1 %v2875_v51 }
 0x2d0   :  { %1434 = vmatpush1.bf16.msra.mxu0 %v2999_v2  ;;  %2880 = vmatprep.subr.bf16.mxu1 %v2879_v43  ;;  %v1572_v2 = vld [vmem:[%s4542_s15 + $0x60] sm:$0xff] }
 0x2d1   :  { %1435 = vmatprep.subr.bf16.mxu0 %v3004_v3  ;;  %v1573_v3 = vld [vmem:[%s4542_s15 + $0x68] sm:$0xff] }
 0x2d2   :  { %v2753_v8 = vpop.f32.mrb[8].mxu1 }
 0x2d3   :  { %v1280_v6 = vpop.f32.mrb[9].mxu1  ;;  %v1289_v25 = vadd.f32 %v2753_v8, %v2505_v12  ;;  %2882 = vmatpush3.bf16.msra.mxu1 %v2879_v43  ;;  %v1575_v8 = vld [vmem:[%s4542_s15 + $0x78] sm:$0xff] }
 0x2d4   :  { %v2754_v13 = vpop.f32.mrb[10].mxu1  ;;  %1436 = vmatpush1.bf16.msra.mxu0 %v3002_v5  ;;  %v1281_v54 = vadd.f32 %v2505_v12, %v1280_v6  ;;  %2884 = vmatprep.subr.bf16.mxu1 %v2883_v63  ;;  %v2887_v5 = vpack.c.bf16 %v1573_v3, %v1572_v2  ;;  %v2488_v6 = vld [vmem:[#allocation8] ss:$0 sm:$0xff] }
 0x2d5   :  { %v1292_v26 = vadd.f32 %v2754_v13, %v2505_v12  ;;  %v1283_v53 = vpop.f32.mrb[11].mxu1  ;;  %1437 = vmatprep.subr.bf16.mxu0 %v3007_v7  ;;  %v1574_v7 = vld [vmem:[%s4542_s15 + $0x70] sm:$0xff]  ;;  %s3448_s15 = smov 28  }
 0x2d6   :  { %v1284_v57 = vadd.f32 %v2505_v12, %v1283_v53 }
 0x2d7   :  { %v1312_v9 = vpack.c.bf16 %v1292_v26, %v1289_v25  ;;  %2886 = vmatpush3.bf16.msra.mxu1 %v2883_v63 }
 0x2d8   :  { %v1311_v10 = vpack.c.bf16 %v1284_v57, %v1281_v54  ;;  %1438 = vmatpush1.bf16.msra.mxu0 %v3005_v24  ;;  %2888 = vmatprep.subr.bf16.mxu1 %v2887_v5 }
 0x2d9   :  { %2896 = vmatprep.subr.bf16.mxu0 %v2863_v4 }
 0x2da   :  { %v2757_v11 = vpop.f32.mrb[12].mxu1 }
 0x2db   :  { %v1296_v41 = vpop.f32.mrb[13].mxu1  ;;  %1456 = vmatmul.mubr.bf16.vlgmr.msra.gmra.mrb[32].mxu0 %v1311_v10  ;;  %v1305_v47 = vadd.f32 %v2757_v11, %v2505_v12  ;;  %2890 = vmatpush3.bf16.msra.mxu1 %v2887_v5 }
 0x2dc   :  { %v2758_v42 = vpop.f32.mrb[14].mxu1  ;;  %1465 = vmatprep.mubr.bf16.mxu0 %v3447_v0  ;;  %v1297_v21 = vadd.f32 %v2505_v12, %v1296_v41  ;;  %2898 = vmatpush3.bf16.msra.mxu0 %v2863_v4 }
 0x2dd   :  { %v1308_v14 = vadd.f32 %v2758_v42, %v2505_v12  ;;  %v1299_v19 = vpop.f32.mrb[15].mxu1  ;;  %2900 = vmatprep.subr.bf16.mxu0 %v2867_v37 }
 0x2de   :  { %v1300_v28 = vadd.f32 %v2505_v12, %v1299_v19  ;;  %v2891_v12 = vpack.c.bf16 %v1575_v8, %v1574_v7 }
 0x2df   :  { %v1314_v29 = vpack.c.bf16 %v1308_v14, %v1305_v47 }
 0x2e0   :  { %v1313_v31 = vpack.c.bf16 %v1300_v28, %v1297_v21  ;;  %2902 = vmatpush3.bf16.msra.mxu0 %v2867_v37  ;;  %2892 = vmatprep.subr.bf16.mxu1 %v2891_v12  ;;  %v1331_v28 = vld [vmem:[#allocation16] sm:$0x3] }
 0x2e1   :  { %2904 = vmatprep.subr.bf16.mxu0 %v2871_v45  ;;  %2894 = vmatpush3.bf16.msra.mxu1 %v2891_v12 }
 0x2e3   :  { %1466 = vmatmul.mubr.bf16.gmra.mrb[36].mxu0 %v1312_v9 }
 0x2e4   :  { %1475 = vmatprep.mubr.bf16.mxu0 %v3447_v0  ;;  %2906 = vmatpush3.bf16.msra.mxu0 %v2871_v45 }
 0x2e5   :  { %2908 = vmatprep.subr.bf16.mxu0 %v2875_v51 }
 0x2e8   :  { %2910 = vmatpush3.bf16.msra.mxu0 %v2875_v51 }
 0x2e9   :  { %2912 = vmatprep.subr.bf16.mxu0 %v2879_v43 }
 0x2eb   :  { %1476 = vmatmul.mubr.bf16.gmra.mrb[40].mxu0 %v1313_v31 }
 0x2ec   :  { %1485 = vmatprep.mubr.bf16.mxu0 %v3447_v0  ;;  %2914 = vmatpush3.bf16.msra.mxu0 %v2879_v43 }
 0x2ed   :  { %2916 = vmatprep.subr.bf16.mxu0 %v2883_v63 }
 0x2f0   :  { %2918 = vmatpush3.bf16.msra.mxu0 %v2883_v63 }
 0x2f1   :  { %2920 = vmatprep.subr.bf16.mxu0 %v2887_v5 }
 0x2f3   :  { %1486 = vmatmul.mubr.bf16.gmra.mrb[44].mxu0 %v1314_v29  ;;  %v1340_v29 = vrot.slane %v1331_v28, %v207_v17 }
 0x2f4   :  { %2922 = vmatpush3.bf16.msra.mxu0 %v2887_v5 }
 0x2f5   :  { %2924 = vmatprep.subr.bf16.mxu0 %v2891_v12 }
 0x2f8   :  { %2926 = vmatpush3.bf16.msra.mxu0 %v2891_v12 }
 0x38e   :  { %v2729_v13 = vpop.f32.mrb[24].mxu0 }
 0x38f   :  { %v3944_v24 = vadd.f32 %v2729_v13, %v2488_v6  ;;  %v692_v25 = vpop.f32.mrb[25].mxu0  ;;  %v203_v13 = vsub.s32 0, %v3712_v16 }
 0x390   :  { %v3946_v26 = vadd.f32 %v2488_v6, %v692_v25  ;;  %v2730_v53 = vpop.f32.mrb[26].mxu0 }
 0x391   :  { %783 = vrot.lane.b32.xlu1 %v3944_v24, %s3442_s28  ;;  %v695_v54 = vpop.f32.mrb[27].mxu0  ;;  %v3952_v57 = vadd.f32 %v2730_v53, %v2488_v6 }
 0x392   :  { %779 = vrot.lane.b32.xlu0 %v3946_v26, %s3442_s28  ;;  %v3954_v9 = vadd.f32 %v2488_v6, %v695_v54  ;;  %v3985_v54 = vrot.slane %v1331_v28, %v203_v13 }
 0x395   :  { %785 = vrot.lane.b32.xlu1 %v3952_v57, %s3442_s28 }
 0x396   :  { %v2733_v10 = vpop.f32.mrb[28].mxu0  ;;  %781 = vrot.lane.b32.xlu0 %v3954_v9, %s3442_s28 }
 0x397   :  { %v708_v11 = vpop.f32.mrb[29].mxu0  ;;  %v3962_v14 = vadd.f32 %v2733_v10, %v2488_v6 }
 0x398   :  { %v3960_v41 = vadd.f32 %v2488_v6, %v708_v11  ;;  %v2734_v42 = vpop.f32.mrb[30].mxu0  ;;  %v3990_v11 = vrot.slane %v3715_v18, %v203_v13 }
 0x399   :  { %v711_v47 = vpop.f32.mrb[31].mxu0  ;;  %v3968_v21 = vadd.f32 %v2734_v42, %v2488_v6 }
 0x39a   :  { %v3964_v19 = vadd.f32 %v2488_v6, %v711_v47  ;;  %787 = vrot.lane.b32.xlu0 %v3960_v41, %s3442_s28 }
 0x39c   :  { %789 = vrot.lane.b32.xlu1 %v3964_v19, %s3442_s28 }
 0x39e   :  { %791 = vrot.lane.b32.xlu0 %v3962_v14, %s3442_s28 }
 0x3a0   :  { %793 = vrot.lane.b32.xlu1 %v3968_v21, %s3442_s28 }
 0x3ae   :  { %v1457_v31 = vpop.f32.mrb[32].mxu0 }
 0x3af   :  { %v1459_v34 = vpop.f32.mrb[33].mxu0 }
 0x3b0   :  { %v1460_v61 = vadd.f32 %v1459_v34, %v1340_v29  ;;  %v1461_v4 = vpop.f32.mrb[34].mxu0 }
 0x3b1   :  { %v1463_v35 = vpop.f32.mrb[35].mxu0  ;;  %v1462_v18 = vadd.f32 %v1461_v4, %v3985_v54 }
 0x3b2   :  { %v2530_v36 = vmul.f32 -1.442695, %v1460_v61  ;;  %v1464_v37 = vadd.f32 %v1463_v35, %v1340_v29 }
 0x3b4   :  { %3049 = vpow2.f32 %v2530_v36  ;;  %v2531_v38 = vmul.f32 -1.442695, %v1464_v37  ;;  %v1458_v37 = vadd.f32 %v1457_v31, %v3985_v54 }
 0x3b6   :  { %3051 = vpow2.f32 %v2531_v38  ;;  %v1467_v39 = vpop.f32.mrb[36].mxu0 }
 0x3b7   :  { %v1469_v45 = vpop.f32.mrb[37].mxu0 }
 0x3b8   :  { %v1470_v46 = vadd.f32 %v1469_v45, %v1340_v29  ;;  %v3978_v50 = vpop.f32.mrb[38].mxu0 }
 0x3b9   :  { %v1473_v51 = vpop.f32.mrb[39].mxu0 }
 0x3ba   :  { %v2532_v55 = vmul.f32 -1.442695, %v1470_v46  ;;  %v1474_v58 = vadd.f32 %v1473_v51, %v1340_v29  ;;  %v316_v46 = vadd.f32 %v3720_v20, %v3990_v11 }
 0x3bc   :  { %3053 = vpow2.f32 %v2532_v55  ;;  %v2533_v17 = vmul.f32 -1.442695, %v1474_v58 }
 0x3be   :  { %v3050_v43 = vpop.eup %3049  ;;  %3055 = vpow2.f32 %v2533_v17  ;;  %v3980_v59 = vpop.f32.mrb[40].mxu0 }
 0x3bf   :  { %v1520_v60 = vadd.f32 1.0, %v3050_v43  ;;  %v1479_v63 = vpop.f32.mrb[41].mxu0  ;;  %v320_v43 = vadd.f32 %v3722_v23, %v3990_v11 }
 0x3c0   :  { %v3052_v2 = vpop.eup %3051  ;;  %v1480_v3 = vadd.f32 %v1479_v63, %v1340_v29  ;;  %v3982_v5 = vpop.f32.mrb[42].mxu0 }
 0x3c1   :  { %3057 = vrcp.f32 %v1520_v60  ;;  %v1521_v7 = vadd.f32 1.0, %v3052_v2  ;;  %v1483_v8 = vpop.f32.mrb[43].mxu0 }
 0x3c2   :  { %v2534_v12 = vmul.f32 -1.442695, %v1480_v3  ;;  %v1484_v6 = vadd.f32 %v1483_v8, %v1340_v29  ;;  %v1468_v3 = vadd.f32 %v1467_v39, %v3985_v54  ;;  %v326_v8 = vadd.f32 %v3724_v30, %v3990_v11 }
 0x3c3   :  { %3059 = vrcp.f32 %v1521_v7  ;;  %v330_v39 = vadd.f32 %v3726_v33, %v3990_v11 }
 0x3c4   :  { %3061 = vpow2.f32 %v2534_v12  ;;  %v2535_v25 = vmul.f32 -1.442695, %v1484_v6  ;;  %v1472_v12 = vadd.f32 %v3978_v50, %v3985_v54 }
 0x3c6   :  { %v3054_v53 = vpop.eup %3053  ;;  %3063 = vpow2.f32 %v2535_v25  ;;  %v3987_v10 = vpop.f32.mrb[44].mxu0 }
 0x3c7   :  { %v1522_v42 = vadd.f32 1.0, %v3054_v53  ;;  %v1489_v47 = vpop.f32.mrb[45].mxu0 }
 0x3c8   :  { %v3056_v34 = vpop.eup %3055  ;;  %v1490_v61 = vadd.f32 %v1489_v47, %v1340_v29  ;;  %v3992_v35 = vpop.f32.mrb[46].mxu0 }
 0x3c9   :  { %3065 = vrcp.f32 %v1522_v42  ;;  %v1523_v16 = vadd.f32 1.0, %v3056_v34  ;;  %v1493_v36 = vpop.f32.mrb[47].mxu0 }
 0x3ca   :  { %v2536_v38 = vmul.f32 -1.442695, %v1490_v61  ;;  %v1494_v28 = vadd.f32 %v1493_v36, %v1340_v29 }
 0x3cb   :  { %v3058_v45 = vpop.eup %3057  ;;  %3067 = vrcp.f32 %v1523_v16  ;;  %v1478_v16 = vadd.f32 %v3980_v59, %v3985_v54  ;;  %v340_v59 = vadd.f32 %v3732_v44, %v3990_v11 }
 0x3cc   :  { %3069 = vpow2.f32 %v2536_v38  ;;  %v2537_v51 = vmul.f32 -1.442695, %v1494_v28  ;;  %v1544_v55 = vmul.f32 %v3058_v45, %v1458_v37  ;;  %v336_v37 = vadd.f32 %v3728_v40, %v3990_v11 }
 0x3cd   :  { %v3060_v58 = vpop.eup %3059  ;;  %v1482_v38 = vadd.f32 %v3982_v5, %v3985_v54  ;;  %v1488_v40 = vadd.f32 %v3987_v10, %v3985_v54  ;;  %v350_v10 = vadd.f32 %v3746_v62, %v3990_v11 }
 0x3ce   :  { %v3062_v17 = vpop.eup %3061  ;;  %3071 = vpow2.f32 %v2537_v51  ;;  %v4000_v60 = vadd.f32 %v1544_v55, %v316_v46  ;;  %v1545_v31 = vmul.f32 %v3060_v58, %v1462_v18  ;;  %v346_v58 = vadd.f32 %v3739_v56, %v3990_v11 }
 0x3cf   :  { %v1524_v29 = vadd.f32 1.0, %v3062_v17  ;;  %v1492_v17 = vadd.f32 %v3992_v35, %v3985_v54  ;;  %v2496_v54 = vmul.f32 -1.442695, %v3954_v9  ;;  %v2501_v11 = vmul.f32 -1.442695, %v3962_v14 }
 0x3d0   :  { %v3064_v63 = vpop.eup %3063  ;;  %2791 = vmatprep.mubr.f32.mxu1 %v4000_v60  ;;  %v4003_v20 = vadd.f32 %v1545_v31, %v320_v43  ;;  %v1681_v4 = vmul.f32 %v4000_v60, %v4000_v60  ;;  %v2500_v35 = vmul.f32 -1.442695, %v3964_v19 }
 0x3d1   :  { %3073 = vrcp.f32 %v1524_v29  ;;  %v1525_v2 = vadd.f32 1.0, %v3064_v63  ;;  %v2495_v29 = vmul.f32 -1.442695, %v3946_v26  ;;  %v2498_v26 = vmul.f32 -1.442695, %v3952_v57 }
 0x3d2   :  { %2792 = vmatmul.mubr.f32.vlgmr.msra.gmra.mrb[16].mxu1 %v4003_v20  ;;  %2835 = vmatprep.mubr.f32.mxu0 %v1681_v4  ;;  %v1682_v23 = vmul.f32 %v4003_v20, %v4003_v20 }
 0x3d3   :  { %v3066_v7 = vpop.eup %3065  ;;  %3075 = vrcp.f32 %v1525_v2  ;;  %v2497_v2 = vmul.f32 -1.442695, %v3944_v24  ;;  %v2499_v24 = vmul.f32 -1.442695, %v3960_v41 }
 0x3d4   :  { %2836 = vmatmul.mubr.f32.vlgmr.msra.gmra.mrb[48].mxu0 %v1682_v23  ;;  %v1546_v6 = vmul.f32 %v3066_v7, %v1468_v3  ;;  %v2502_v23 = vmul.f32 -1.442695, %v3968_v21 }
 0x3d5   :  { %v3068_v13 = vpop.eup %3067 }
 0x3d6   :  { %v3070_v25 = vpop.eup %3069  ;;  %v4017_v53 = vadd.f32 %v1546_v6, %v326_v8  ;;  %v1547_v42 = vmul.f32 %v3068_v13, %v1472_v12 }
 0x3d7   :  { %v1526_v47 = vadd.f32 1.0, %v3070_v25 }
 0x3d8   :  { %v3072_v34 = vpop.eup %3071  ;;  %2794 = vmatprep.mubr.f32.mxu1 %v4017_v53  ;;  %v4020_v61 = vadd.f32 %v1547_v42, %v330_v39  ;;  %v1683_v30 = vmul.f32 %v4017_v53, %v4017_v53 }
 0x3d9   :  { %3077 = vrcp.f32 %v1526_v47  ;;  %v1527_v50 = vadd.f32 1.0, %v3072_v34 }
 0x3da   :  { %2795 = vmatmul.mubr.f32.gmra.mrb[18].mxu1 %v4020_v61  ;;  %2838 = vmatprep.mubr.f32.mxu0 %v1683_v30  ;;  %v1684_v33 = vmul.f32 %v4020_v61, %v4020_v61 }
 0x3db   :  { %v3074_v36 = vpop.eup %3073  ;;  %3079 = vrcp.f32 %v1527_v50 }
 0x3dc   :  { %2839 = vmatmul.mubr.f32.gmra.mrb[50].mxu0 %v1684_v33  ;;  %v1548_v28 = vmul.f32 %v3074_v36, %v1478_v16  ;;  %3081 = vpow2.f32 %v2495_v29 }
 0x3dd   :  { %v3076_v45 = vpop.eup %3075  ;;  %3083 = vpow2.f32 %v2497_v2 }
 0x3de   :  { %v4035_v46 = vadd.f32 %v1548_v28, %v336_v37  ;;  %v1549_v18 = vmul.f32 %v3076_v45, %v1482_v38  ;;  %3085 = vpow2.f32 %v2496_v54 }
 0x3df   :  { %3087 = vpow2.f32 %v2498_v26 }
 0x3e0   :  { %2797 = vmatprep.mubr.f32.mxu1 %v4035_v46  ;;  %v4038_v51 = vadd.f32 %v1549_v18, %v340_v59  ;;  %v1685_v55 = vmul.f32 %v4035_v46, %v4035_v46  ;;  %3089 = vpow2.f32 %v2499_v24 }
 0x3e1   :  { %3091 = vpow2.f32 %v2501_v11 }
 0x3e2   :  { %2798 = vmatmul.mubr.f32.gmra.mrb[20].mxu1 %v4038_v51  ;;  %2841 = vmatprep.mubr.f32.mxu0 %v1685_v55  ;;  %v1686_v5 = vmul.f32 %v4038_v51, %v4038_v51  ;;  %3093 = vpow2.f32 %v2500_v35 }
 0x3e3   :  { %v3078_v44 = vpop.eup %3077  ;;  %3095 = vpow2.f32 %v2502_v23 }
 0x3e4   :  { %2842 = vmatmul.mubr.f32.gmra.mrb[52].mxu0 %v1686_v5  ;;  %v1550_v43 = vmul.f32 %v3078_v44, %v1488_v40 }
 0x3e5   :  { %v3080_v31 = vpop.eup %3079 }
 0x3e6   :  { %v4054_v63 = vadd.f32 %v1550_v43, %v346_v58  ;;  %v1551_v4 = vmul.f32 %v3080_v31, %v1492_v17  ;;  %v3082_v9 = vpop.eup %3081 }
 0x3e7   :  { %v3084_v7 = vpop.eup %3083  ;;  %v747_v8 = vadd.f32 1.0, %v3082_v9 }
 0x3e8   :  { %2800 = vmatprep.mubr.f32.mxu1 %v4054_v63  ;;  %v4058_v3 = vadd.f32 %v1551_v4, %v350_v10  ;;  %v1687_v56 = vmul.f32 %v4054_v63, %v4054_v63  ;;  %v3086_v12 = vpop.eup %3085  ;;  %v749_v6 = vadd.f32 1.0, %v3084_v7 }
 0x3e9   :  { %v3088_v57 = vpop.eup %3087  ;;  %3097 = vrcp.f32 %v747_v8  ;;  %v748_v13 = vadd.f32 1.0, %v3086_v12 }
 0x3ea   :  { %2801 = vmatmul.mubr.f32.gmra.mrb[22].mxu1 %v4058_v3  ;;  %2844 = vmatprep.mubr.f32.mxu0 %v1687_v56  ;;  %v1688_v62 = vmul.f32 %v4058_v3, %v4058_v3  ;;  %v3090_v41 = vpop.eup %3089  ;;  %3099 = vrcp.f32 %v749_v6  ;;  %v750_v25 = vadd.f32 1.0, %v3088_v57 }
 0x3eb   :  { %v3092_v14 = vpop.eup %3091  ;;  %3101 = vrcp.f32 %v748_v13  ;;  %v751_v39 = vadd.f32 1.0, %v3090_v41 }
 0x3ec   :  { %2845 = vmatmul.mubr.f32.gmra.mrb[54].mxu0 %v1688_v62  ;;  %v3094_v19 = vpop.eup %3093  ;;  %3103 = vrcp.f32 %v750_v25  ;;  %v753_v42 = vadd.f32 1.0, %v3092_v14 }
 0x3ed   :  { %3105 = vrcp.f32 %v751_v39  ;;  %v752_v21 = vadd.f32 1.0, %v3094_v19  ;;  %v3096_v47 = vpop.eup %3095 }
 0x3ee   :  { %3107 = vrcp.f32 %v753_v42  ;;  %v754_v33 = vadd.f32 1.0, %v3096_v47 }
 0x3ef   :  { %3109 = vrcp.f32 %v752_v21 }
 0x3f0   :  { %3111 = vrcp.f32 %v754_v33 }
 0x3f3   :  { %v3098_v34 = vpop.eup %3097 }
 0x3f4   :  { %v3100_v36 = vpop.eup %3099 }
 0x3f5   :  { %v3102_v37 = vpop.eup %3101 }
 0x3f6   :  { %v3104_v18 = vpop.eup %3103 }
 0x3f7   :  { %v3106_v55 = vpop.eup %3105 }
 0x3f8   :  { %v3108_v17 = vpop.eup %3107 }
 0x3f9   :  { %v3110_v43 = vpop.eup %3109 }
 0x3fa   :  { %v3112_v2 = vpop.eup %3111 }
 0x403   :  { %v784_v30 = vpop.permute.xlu1 %783 }
 0x404   :  { %v780_v50 = vpop.permute.xlu0 %779  ;;  %v805_v28 = vmul.f32 %v3100_v36, %v784_v30 }
 0x405   :  { %v803_v16 = vmul.f32 %v3098_v34, %v780_v50 }
 0x407   :  { %819 = vrot.lane.b32.xlu0 %v803_v16, %s3448_s15  ;;  %v786_v59 = vpop.permute.xlu1 %785 }
 0x408   :  { %v782_v38 = vpop.permute.xlu0 %781  ;;  %v806_v5 = vmul.f32 %v3104_v18, %v786_v59 }
 0x409   :  { %v804_v45 = vmul.f32 %v3102_v37, %v782_v38 }
 0x40b   :  { %821 = vrot.lane.b32.xlu1 %v804_v45, %s3448_s15  ;;  %823 = vrot.lane.b32.xlu0 %v805_v28, %s3448_s15 }
 0x40c   :  { %v788_v40 = vpop.permute.xlu0 %787 }
 0x40d   :  { %v807_v44 = vmul.f32 %v3106_v55, %v788_v40 }
 0x40e   :  { %v790_v58 = vpop.permute.xlu1 %789 }
 0x40f   :  { %825 = vrot.lane.b32.xlu1 %v806_v5, %s3448_s15  ;;  %827 = vrot.lane.b32.xlu0 %v807_v44, %s3448_s15  ;;  %v808_v29 = vmul.f32 %v3110_v43, %v790_v58 }
 0x410   :  { %v792_v31 = vpop.permute.xlu0 %791 }
 0x411   :  { %v809_v10 = vmul.f32 %v3108_v17, %v792_v31 }
 0x412   :  { %v794_v4 = vpop.permute.xlu1 %793 }
 0x413   :  { %829 = vrot.lane.b32.xlu1 %v808_v29, %s3448_s15  ;;  %831 = vrot.lane.b32.xlu0 %v809_v10, %s3448_s15  ;;  %v810_v56 = vmul.f32 %v3112_v2, %v794_v4 }
 0x417   :  { %833 = vrot.lane.b32.xlu1 %v810_v56, %s3448_s15 }
 0x479   :  { %v820_v54 = vpop.permute.xlu0 %819 }
 0x47a   :  { %v4072_v62 = vadd.f32 %v820_v54, %v3761_v22 }
 0x47c   :  { %859 = vrot.lane.b32.xlu0 %v4072_v62, %s3449_s22 }
 0x47d   :  { %v822_v26 = vpop.permute.xlu1 %821  ;;  %v824_v24 = vpop.permute.xlu0 %823 }
 0x47e   :  { %v4077_v11 = vadd.f32 %v822_v26, %v3767_v32  ;;  %v4080_v35 = vadd.f32 %v824_v24, %v3759_v15 }
 0x480   :  { %861 = vrot.lane.b32.xlu1 %v4077_v11, %s3449_s22  ;;  %863 = vrot.lane.b32.xlu0 %v4080_v35, %s3449_s22 }
 0x481   :  { %v826_v22 = vpop.permute.xlu1 %825  ;;  %v828_v9 = vpop.permute.xlu0 %827 }
 0x482   :  { %v4087_v23 = vadd.f32 %v826_v22, %v3764_v27  ;;  %v4090_v7 = vadd.f32 %v828_v9, %v3781_v52 }
 0x484   :  { %865 = vrot.lane.b32.xlu1 %v4087_v23, %s3449_s22  ;;  %867 = vrot.lane.b32.xlu0 %v4090_v7, %s3449_s22 }
 0x485   :  { %v830_v15 = vpop.permute.xlu1 %829  ;;  %v832_v32 = vpop.permute.xlu0 %831 }
 0x486   :  { %v4097_v8 = vadd.f32 %v830_v15, %v3787_v1  ;;  %v4100_v12 = vadd.f32 %v832_v32, %v3779_v48 }
 0x488   :  { %869 = vrot.lane.b32.xlu1 %v4097_v8, %s3449_s22  ;;  %871 = vrot.lane.b32.xlu0 %v4100_v12, %s3449_s22 }
 0x489   :  { %v834_v27 = vpop.permute.xlu1 %833 }
 0x48a   :  { %v4107_v52 = vadd.f32 %v834_v27, %v3784_v49 }
 0x48c   :  { %873 = vrot.lane.b32.xlu1 %v4107_v52, %s3449_s22 }
 0x4a5   :  { %v4111_v6 = vpop.f32.mrb[16].mxu1 }
 0x4a6   :  { %v4115_v1 = vmul.f32 %v4111_v6, %v4111_v6  ;;  %v4117_v48 = vpop.f32.mrb[17].mxu1 }
 0x4a7   :  { %v4121_v57 = vmul.f32 %v4117_v48, %v4117_v48  ;;  %v4123_v13 = vpop.f32.mrb[48].mxu0 }
 0x4a8   :  { %v1803_v49 = vsub.f32 %v4123_v13, %v4115_v1  ;;  %v4127_v41 = vpop.f32.mrb[49].mxu0  ;;  %v1899_v1 = vld [vmem:[%s4543_s16] sm:$0xff]  ;;  %v1901_v13 = vld [vmem:[%s4543_s16 + $0x10] sm:$0xff] }
 0x4a9   :  { %v1802_v25 = vsub.f32 %v4127_v41, %v4121_v57  ;;  %v1902_v57 = vld [vmem:[%s4543_s16 + $0x18] sm:$0xf] }
 0x4aa   :  { %v2930_v41 = vpack.c.bf16 %v1902_v57, %v1899_v1 }
 0x4ad   :  { %v4131_v14 = vpop.f32.mrb[18].mxu1 }
 0x4ae   :  { %v4135_v39 = vmul.f32 %v4131_v14, %v4131_v14  ;;  %v4137_v19 = vpop.f32.mrb[19].mxu1 }
 0x4af   :  { %v4141_v42 = vmul.f32 %v4137_v19, %v4137_v19  ;;  %v4143_v21 = vpop.f32.mrb[50].mxu0 }
 0x4b0   :  { %v1805_v47 = vsub.f32 %v4143_v21, %v4135_v39  ;;  %v4147_v34 = vpop.f32.mrb[51].mxu0 }
 0x4b1   :  { %v1804_v30 = vsub.f32 %v4147_v34, %v4141_v42 }
 0x4b5   :  { %v4151_v50 = vpop.f32.mrb[20].mxu1 }
 0x4b6   :  { %v4155_v16 = vmul.f32 %v4151_v50, %v4151_v50  ;;  %v4157_v33 = vpop.f32.mrb[21].mxu1 }
 0x4b7   :  { %v4161_v36 = vmul.f32 %v4157_v33, %v4157_v33  ;;  %v4163_v37 = vpop.f32.mrb[52].mxu0 }
 0x4b8   :  { %v4167_v28 = vpop.f32.mrb[53].mxu0  ;;  %v4556_v39 = vsub.f32 %v4163_v37, %v4155_v16 }
 0x4b9   :  { %v4555_v34 = vsub.f32 %v4167_v28, %v4161_v36 }
 0x4ba   :  { %v1815_v21 = vmax.f32 %v4556_v39, 0.0 }
 0x4bd   :  { %v4171_v59 = vpop.f32.mrb[22].mxu1 }
 0x4be   :  { %v4175_v18 = vmul.f32 %v4171_v59, %v4171_v59  ;;  %v4177_v55 = vpop.f32.mrb[23].mxu1 }
 0x4bf   :  { %v4181_v40 = vmul.f32 %v4177_v55, %v4177_v55  ;;  %v4183_v5 = vpop.f32.mrb[54].mxu0 }
 0x4c0   :  { %v4187_v58 = vpop.f32.mrb[55].mxu0 }
 0x4ee   :  { %v860_v43 = vpop.permute.xlu0 %859 }
 0x4ef   :  { %v884_v31 = vsel %vm883_vm0, %v860_v43, 0.0 }
 0x4f0   :  { %885 = vadd.xlane.f32.xlu0 %v884_v31 }
 0x4f2   :  { %v862_v29 = vpop.permute.xlu1 %861  ;;  %v864_v10 = vpop.permute.xlu0 %863 }
 0x4f3   :  { %v887_v4 = vsel %vm883_vm0, %v862_v29, 0.0  ;;  %v890_v2 = vsel %vm883_vm0, %v864_v10, 0.0 }
 0x4f4   :  { %888 = vadd.xlane.f32.xlu1 %v887_v4  ;;  %891 = vadd.xlane.f32.xlu0 %v890_v2 }
 0x4f6   :  { %v866_v56 = vpop.permute.xlu1 %865  ;;  %v868_v54 = vpop.permute.xlu0 %867 }
 0x4f7   :  { %v893_v26 = vsel %vm883_vm0, %v866_v56, 0.0  ;;  %v896_v24 = vsel %vm883_vm0, %v868_v54, 0.0 }
 0x4f8   :  { %894 = vadd.xlane.f32.xlu0 %v893_v26  ;;  %897 = vadd.xlane.f32.xlu1 %v896_v24 }
 0x4fa   :  { %v870_v22 = vpop.permute.xlu1 %869  ;;  %v872_v9 = vpop.permute.xlu0 %871 }
 0x4fb   :  { %v899_v15 = vsel %vm883_vm0, %v870_v22, 0.0  ;;  %v902_v32 = vsel %vm883_vm0, %v872_v9, 0.0 }
 0x4fc   :  { %900 = vadd.xlane.f32.xlu0 %v899_v15  ;;  %903 = vadd.xlane.f32.xlu1 %v902_v32 }
 0x4fe   :  { %v874_v27 = vpop.permute.xlu1 %873 }
 0x4ff   :  { %v905_v43 = vsel %vm883_vm0, %v874_v27, 0.0 }
 0x500   :  { %906 = vadd.xlane.f32.xlu0 %v905_v43 }
 0x57d   :  { %v886_v31 = vpop.xlane.xlu0 %885 }
 0x57e   :  { %v909_v2 = vmul.f32 0.25, %v886_v31 }
 0x580   :  { %v917_v9 = vsub.f32 %v4072_v62, %v909_v2 }
 0x581   :  { %v889_v29 = vpop.xlane.xlu1 %888  ;;  %v892_v10 = vpop.xlane.xlu0 %891 }
 0x582   :  { %v911_v4 = vmul.f32 0.25, %v892_v10  ;;  %v910_v56 = vmul.f32 0.25, %v889_v29  ;;  %v925_v62 = vmul.f32 %v917_v9, %v917_v9 }
 0x584   :  { %v919_v54 = vsub.f32 %v4080_v35, %v911_v4  ;;  %v918_v15 = vsub.f32 %v4077_v11, %v910_v56 }
 0x585   :  { %v898_v26 = vpop.xlane.xlu1 %897  ;;  %v895_v24 = vpop.xlane.xlu0 %894 }
 0x586   :  { %v912_v44 = vmul.f32 0.25, %v895_v24  ;;  %1016 = vrot.lane.b32.xlu0 %v919_v54, %s3449_s22  ;;  %v927_v22 = vmul.f32 %v919_v54, %v919_v54  ;;  %v913_v35 = vmul.f32 0.25, %v898_v26  ;;  %v926_v10 = vmul.f32 %v918_v15, %v918_v15 }
 0x588   :  { %945 = vrot.lane.b32.xlu1 %v927_v22, %s3449_s22  ;;  %v920_v43 = vsub.f32 %v4087_v23, %v912_v44  ;;  %v921_v11 = vsub.f32 %v4090_v7, %v913_v35 }
 0x589   :  { %v904_v32 = vpop.xlane.xlu1 %903  ;;  %v901_v27 = vpop.xlane.xlu0 %900 }
 0x58a   :  { %v915_v31 = vmul.f32 0.25, %v904_v32  ;;  %1012 = vrot.lane.b32.xlu0 %v917_v9, %s3449_s22  ;;  %v929_v23 = vmul.f32 %v921_v11, %v921_v11  ;;  %v914_v44 = vmul.f32 0.25, %v901_v27  ;;  %v928_v54 = vmul.f32 %v920_v43, %v920_v43 }
 0x58c   :  { %v923_v29 = vsub.f32 %v4100_v12, %v915_v31  ;;  %1018 = vrot.lane.b32.xlu1 %v920_v43, %s3449_s22  ;;  %v922_v26 = vsub.f32 %v4097_v8, %v914_v44 }
 0x58d   :  { %v907_v4 = vpop.xlane.xlu0 %906 }
 0x58e   :  { %943 = vrot.lane.b32.xlu0 %v926_v10, %s3449_s22  ;;  %v931_v2 = vmul.f32 %v923_v29, %v923_v29  ;;  %v916_v56 = vmul.f32 0.25, %v907_v4  ;;  %v930_v24 = vmul.f32 %v922_v26, %v922_v26 }
 0x590   :  { %941 = vrot.lane.b32.xlu1 %v925_v62, %s3449_s22  ;;  %v924_v12 = vsub.f32 %v4107_v52, %v916_v56 }
 0x592   :  { %953 = vrot.lane.b32.xlu0 %v931_v2, %s3449_s22  ;;  %v932_v7 = vmul.f32 %v924_v12, %v924_v12 }
 0x594   :  { %1014 = vrot.lane.b32.xlu1 %v918_v15, %s3449_s22 }
 0x596   :  { %949 = vrot.lane.b32.xlu0 %v929_v23, %s3449_s22 }
 0x598   :  { %947 = vrot.lane.b32.xlu1 %v928_v54, %s3449_s22 }
 0x59c   :  { %955 = vrot.lane.b32.xlu1 %v932_v7, %s3449_s22 }
 0x5a0   :  { %951 = vrot.lane.b32.xlu1 %v930_v24, %s3449_s22 }
 0x5f8   :  { %v1017_v22 = vpop.permute.xlu0 %1016 }
 0x5fa   :  { %v946_v9 = vpop.permute.xlu1 %945 }
 0x5fb   :  { %v971_v15 = vsel %vm883_vm0, %v946_v9, 0.0 }
 0x5fc   :  { %972 = vadd.xlane.f32.xlu0 %v971_v15  ;;  %v1013_v32 = vpop.permute.xlu0 %1012 }
 0x5fe   :  { %v1019_v52 = vpop.permute.xlu1 %1018 }
 0x600   :  { %v944_v27 = vpop.permute.xlu0 %943 }
 0x601   :  { %v968_v43 = vsel %vm883_vm0, %v944_v27, 0.0 }
 0x602   :  { %v942_v31 = vpop.permute.xlu1 %941  ;;  %969 = vadd.xlane.f32.xlu1 %v968_v43 }
 0x603   :  { %v965_v8 = vsel %vm883_vm0, %v942_v31, 0.0 }
 0x604   :  { %966 = vadd.xlane.f32.xlu0 %v965_v8  ;;  %v954_v4 = vpop.permute.xlu0 %953 }
 0x605   :  { %v983_v2 = vsel %vm883_vm0, %v954_v4, 0.0 }
 0x606   :  { %v1015_v35 = vpop.permute.xlu1 %1014 }
 0x608   :  { %v950_v56 = vpop.permute.xlu0 %949 }
 0x609   :  { %v977_v44 = vsel %vm883_vm0, %v950_v56, 0.0 }
 0x60a   :  { %v948_v10 = vpop.permute.xlu1 %947 }
 0x60b   :  { %v974_v62 = vsel %vm883_vm0, %v948_v10, 0.0 }
 0x60c   :  { %975 = vadd.xlane.f32.xlu0 %v974_v62 }
 0x60e   :  { %v956_v23 = vpop.permute.xlu1 %955 }
 0x60f   :  { %v986_v7 = vsel %vm883_vm0, %v956_v23, 0.0 }
 0x612   :  { %v952_v54 = vpop.permute.xlu1 %951 }
 0x613   :  { %1022 = vrot.lane.b32.xlu1 %v922_v26, %s3449_s22  ;;  %v980_v24 = vsel %vm883_vm0, %v952_v54, 0.0 }
 0x622   :  { %1020 = vrot.lane.b32.xlu0 %v921_v11, %s3449_s22 }
 0x637   :  { %984 = vadd.xlane.f32.xlu1 %v983_v2  ;;  %v2503_v2 = vld [vmem:[#allocation10] ss:$0 sm:$0xff] }
 0x638   :  { %v1036_v54 = vmul.f32 %v2503_v2, %v1013_v32 }
 0x63b   :  { %978 = vadd.xlane.f32.xlu1 %v977_v44 }
 0x63f   :  { %987 = vadd.xlane.f32.xlu1 %v986_v7 }
 0x641   :  { %981 = vadd.xlane.f32.xlu0 %v980_v24 }
 0x650   :  { %1026 = vrot.lane.b32.xlu1 %v924_v12, %s3449_s22  ;;  %v1037_v12 = vmul.f32 %v2503_v2, %v1015_v35 }
 0x657   :  { %1024 = vrot.lane.b32.xlu0 %v923_v29, %s3449_s22  ;;  %v1038_v29 = vmul.f32 %v2503_v2, %v1017_v22  ;;  %v1039_v22 = vmul.f32 %v2503_v2, %v1019_v52 }
 0x689   :  { %v973_v11 = vpop.xlane.xlu0 %972 }
 0x68a   :  { %v991_v26 = vmul.f32 0.25, %v973_v11  ;;  %v2504_v11 = vld [vmem:[#allocation11] ss:$0 sm:$0xff] }
 0x68c   :  { %v1046_v9 = vadd.f32 1e-05, %v991_v26 }
 0x68e   :  { %3113 = vrsqrt.f32 %v1046_v9 }
 0x68f   :  { %v970_v15 = vpop.xlane.xlu1 %969 }
 0x690   :  { %v990_v27 = vmul.f32 0.25, %v970_v15 }
 0x691   :  { %v967_v43 = vpop.xlane.xlu0 %966 }
 0x692   :  { %v1045_v31 = vadd.f32 1e-05, %v990_v27  ;;  %v989_v8 = vmul.f32 0.25, %v967_v43 }
 0x694   :  { %3115 = vrsqrt.f32 %v1045_v31  ;;  %v1044_v10 = vadd.f32 1e-05, %v989_v8 }
 0x696   :  { %3117 = vrsqrt.f32 %v1044_v10 }
 0x698   :  { %v3114_v23 = vpop.eup %3113 }
 0x699   :  { %v976_v62 = vpop.xlane.xlu0 %975  ;;  %v1062_v9 = vmul.f32 %v3114_v23, %v1038_v29 }
 0x69a   :  { %v992_v4 = vmul.f32 0.25, %v976_v62 }
 0x69b   :  { %v4239_v31 = vadd.f32 %v2504_v11, %v1062_v9 }
 0x69c   :  { %v1047_v56 = vadd.f32 1e-05, %v992_v4 }
 0x69d   :  { %v1089_v8 = vsel %vm883_vm0, %v4239_v31, -inf }
 0x69e   :  { %v3116_v44 = vpop.eup %3115  ;;  %3119 = vrsqrt.f32 %v1047_v56  ;;  %v1023_v56 = vpop.permute.xlu1 %1022 }
 0x69f   :  { %v1061_v7 = vmul.f32 %v3116_v44, %v1037_v12 }
 0x6a0   :  { %v3118_v24 = vpop.eup %3117 }
 0x6a1   :  { %v4231_v26 = vadd.f32 %v2504_v11, %v1061_v7  ;;  %v1060_v15 = vmul.f32 %v3118_v24, %v1036_v54  ;;  %v1021_v7 = vpop.permute.xlu0 %1020 }
 0x6a3   :  { %v1086_v27 = vsel %vm883_vm0, %v4231_v26, -inf  ;;  %v4235_v43 = vadd.f32 %v2504_v11, %v1060_v15 }
 0x6a4   :  { %1087 = vmax.xlane.f32.xlu1 %v1086_v27 }
 0x6a5   :  { %v1083_v35 = vsel %vm883_vm0, %v4235_v43, -inf }
 0x6a6   :  { %1084 = vmax.xlane.f32.xlu0 %v1083_v35 }
 0x6a8   :  { %v3120_v32 = vpop.eup %3119 }
 0x6a9   :  { %v1063_v10 = vmul.f32 %v3120_v32, %v1039_v22 }
 0x6aa   :  { %1090 = vmax.xlane.f32.xlu0 %v1089_v8 }
 0x6ab   :  { %v1078_v62 = vadd.f32 %v2504_v11, %v1063_v10 }
 0x6ad   :  { %v1092_v4 = vsel %vm883_vm0, %v1078_v62, -inf }
 0x6ae   :  { %1093 = vmax.xlane.f32.xlu0 %v1092_v4  ;;  %v1040_v4 = vmul.f32 %v2503_v2, %v1021_v7 }
 0x6c4   :  { %v985_v23 = vpop.xlane.xlu1 %984 }
 0x6c5   :  { %v995_v12 = vmul.f32 0.25, %v985_v23 }
 0x6c7   :  { %v1050_v44 = vadd.f32 1e-05, %v995_v12 }
 0x6c8   :  { %v979_v29 = vpop.xlane.xlu1 %978 }
 0x6c9   :  { %v993_v54 = vmul.f32 0.25, %v979_v29  ;;  %3121 = vrsqrt.f32 %v1050_v44 }
 0x6cb   :  { %v1048_v24 = vadd.f32 1e-05, %v993_v54  ;;  %v1041_v54 = vmul.f32 %v2503_v2, %v1023_v56 }
 0x6cc   :  { %v988_v52 = vpop.xlane.xlu1 %987 }
 0x6cd   :  { %3123 = vrsqrt.f32 %v1048_v24  ;;  %v996_v15 = vmul.f32 0.25, %v988_v52 }
 0x6ce   :  { %v982_v9 = vpop.xlane.xlu0 %981 }
 0x6cf   :  { %v1051_v27 = vadd.f32 1e-05, %v996_v15  ;;  %v994_v35 = vmul.f32 0.25, %v982_v9 }
 0x6d0   :  { %v1027_v29 = vpop.permute.xlu1 %1026 }
 0x6d1   :  { %3125 = vrsqrt.f32 %v1051_v27  ;;  %v1049_v22 = vadd.f32 1e-05, %v994_v35  ;;  %v1043_v45 = vmul.f32 %v2503_v2, %v1027_v29 }
 0x6d2   :  { %v1025_v32 = vpop.permute.xlu0 %1024 }
 0x6d3   :  { %3127 = vrsqrt.f32 %v1049_v22  ;;  %v1042_v8 = vmul.f32 %v2503_v2, %v1025_v32  ;;  %v3122_v10 = vpop.eup %3121 }
 0x6d5   :  { %v1066_v12 = vmul.f32 %v3122_v10, %v1042_v8 }
 0x6d7   :  { %v3124_v23 = vpop.eup %3123  ;;  %v1081_v52 = vadd.f32 %v2504_v11, %v1066_v12 }
 0x6d8   :  { %v1064_v17 = vmul.f32 %v3124_v23, %v1040_v4 }
 0x6d9   :  { %v1101_v35 = vsel %vm883_vm0, %v1081_v52, -inf }
 0x6da   :  { %v1079_v38 = vadd.f32 %v2504_v11, %v1064_v17 }
 0x6db   :  { %v3126_v44 = vpop.eup %3125 }
 0x6dc   :  { %v1095_v24 = vsel %vm883_vm0, %v1079_v38, -inf  ;;  %v1067_v9 = vmul.f32 %v3126_v44, %v1043_v45 }
 0x6dd   :  { %v3128_v15 = vpop.eup %3127  ;;  %1096 = vmax.xlane.f32.xlu1 %v1095_v24 }
 0x6de   :  { %v1065_v27 = vmul.f32 %v3128_v15, %v1041_v54  ;;  %v1082_v32 = vadd.f32 %v2504_v11, %v1067_v9 }
 0x6e0   :  { %v1080_v22 = vadd.f32 %v2504_v11, %v1065_v27  ;;  %v1104_v17 = vsel %vm883_vm0, %v1082_v32, -inf }
 0x6e1   :  { %1102 = vmax.xlane.f32.xlu1 %v1101_v35 }
 0x6e2   :  { %v1098_v7 = vsel %vm883_vm0, %v1080_v22, -inf }
 0x6e3   :  { %1099 = vmax.xlane.f32.xlu0 %v1098_v7 }
 0x6e7   :  { %1105 = vmax.xlane.f32.xlu0 %v1104_v17 }
 0x731   :  { %v1088_v56 = vpop.xlane.xlu1 %1087 }
 0x732   :  { %v1108_v2 = vsub.f32 %v4231_v26, %v1088_v56 }
 0x733   :  { %v1085_v8 = vpop.xlane.xlu0 %1084 }
 0x734   :  { %v1117_v10 = vmul.f32 1.442695, %v1108_v2  ;;  %v1107_v4 = vsub.f32 %v4235_v43, %v1085_v8 }
 0x736   :  { %3129 = vpow2.f32 %v1117_v10  ;;  %v1115_v45 = vmul.f32 1.442695, %v1107_v4 }
 0x737   :  { %v1091_v23 = vpop.xlane.xlu0 %1090 }
 0x738   :  { %3131 = vpow2.f32 %v1115_v45  ;;  %v1109_v12 = vsub.f32 %v4239_v31, %v1091_v23 }
 0x73a   :  { %v1119_v29 = vmul.f32 1.442695, %v1109_v12 }
 0x73b   :  { %v1094_v44 = vpop.xlane.xlu0 %1093 }
 0x73c   :  { %3133 = vpow2.f32 %v1119_v29  ;;  %v1110_v11 = vsub.f32 %v1078_v62, %v1094_v44 }
 0x73e   :  { %v1121_v54 = vmul.f32 1.442695, %v1110_v11 }
 0x740   :  { %v4251_v24 = vpop.eup %3129  ;;  %3135 = vpow2.f32 %v1121_v54 }
 0x741   :  { %v1134_v26 = vsel %vm883_vm0, %v4251_v24, 0.0 }
 0x742   :  { %v4255_v15 = vpop.eup %3131  ;;  %1135 = vadd.xlane.f32.xlu0 %v1134_v26 }
 0x743   :  { %v1131_v43 = vsel %vm883_vm0, %v4255_v15, 0.0 }
 0x744   :  { %1132 = vadd.xlane.f32.xlu1 %v1131_v43  ;;  %v1810_v43 = vmax.f32 %v1802_v25, 0.0  ;;  %v1904_v25 = vld [vmem:[%s4543_s16 + $0x28] sm:$0xf] }
 0x746   :  { %v4259_v9 = vpop.eup %3133 }
 0x747   :  { %v1137_v31 = vsel %vm883_vm0, %v4259_v9, 0.0 }
 0x748   :  { %1138 = vadd.xlane.f32.xlu1 %v1137_v31  ;;  %v1811_v31 = vmax.f32 %v1803_v49, 0.0 }
 0x74a   :  { %v4263_v62 = vpop.eup %3135 }
 0x74b   :  { %v1140_v27 = vsel %vm883_vm0, %v4263_v62, 0.0 }
 0x74c   :  { %1141 = vadd.xlane.f32.xlu0 %v1140_v27  ;;  %v1900_v27 = vld [vmem:[%s4543_s16 + $0x8] sm:$0xff] }
 0x76a   :  { %v1097_v35 = vpop.xlane.xlu1 %1096 }
 0x76b   :  { %v1111_v7 = vsub.f32 %v1079_v38, %v1097_v35  ;;  %v1903_v35 = vld [vmem:[%s4543_s16 + $0x20] sm:$0xf]  ;;  %s3452_s16 = smov 8  }
 0x76d   :  { %v1123_v17 = vmul.f32 1.442695, %v1111_v7  ;;  %v2927_v7 = vpack.c.bf16 %v1903_v35, %v1900_v27 }
 0x76e   :  { %v1103_v56 = vpop.xlane.xlu1 %1102 }
 0x76f   :  { %3137 = vpow2.f32 %v1123_v17  ;;  %v1113_v2 = vsub.f32 %v1081_v52, %v1103_v56  ;;  %2929 = vmatprep.subr.msk.bf16.mxu1 %vm2928_vm4, %v2927_v7  ;;  %v2933_v17 = vpack.c.bf16 %v1904_v25, %v1901_v13 }
 0x770   :  { %v1100_v8 = vpop.xlane.xlu0 %1099  ;;  %2932 = vmatpush1.bf16.msk.msra.mxu1 %vm2928_vm4, %v2930_v41 }
 0x771   :  { %v1127_v10 = vmul.f32 1.442695, %v1113_v2  ;;  %v1112_v4 = vsub.f32 %v1080_v22, %v1100_v8  ;;  %2935 = vmatprep.subr.msk.bf16.mxu0 %vm2928_vm4, %v2933_v17  ;;  %2320 = vmatprep.subr.bf16.mxu1 %v3447_v0  ;;  %v3451_v2 = vmov 0.0  }
 0x772   :  { %2938 = vmatpush3.bf16.msk.msra.mxu0 %vm2928_vm4, %v2933_v17  ;;  %2004 = vmatprep.mubr.f32.mxu1 %v3451_v2 }
 0x773   :  { %3139 = vpow2.f32 %v1127_v10  ;;  %v1125_v45 = vmul.f32 1.442695, %v1112_v4 }
 0x774   :  { %v1106_v23 = vpop.xlane.xlu0 %1105 }
 0x775   :  { %3141 = vpow2.f32 %v1125_v45  ;;  %v1114_v12 = vsub.f32 %v1082_v32, %v1106_v23 }
 0x777   :  { %v1129_v29 = vmul.f32 1.442695, %v1114_v12 }
 0x779   :  { %v4267_v44 = vpop.eup %3137  ;;  %3143 = vpow2.f32 %v1129_v29 }
 0x77a   :  { %v1143_v11 = vsel %vm883_vm0, %v4267_v44, 0.0 }
 0x77b   :  { %1144 = vadd.xlane.f32.xlu1 %v1143_v11 }
 0x77d   :  { %v4271_v38 = vpop.eup %3139 }
 0x77e   :  { %v1149_v52 = vsel %vm883_vm0, %v4271_v38, 0.0 }
 0x77f   :  { %v4275_v54 = vpop.eup %3141  ;;  %1150 = vadd.xlane.f32.xlu1 %v1149_v52 }
 0x780   :  { %v1146_v22 = vsel %vm883_vm0, %v4275_v54, 0.0 }
 0x781   :  { %1147 = vadd.xlane.f32.xlu0 %v1146_v22  ;;  %v1813_v22 = vmax.f32 %v1805_v47, 0.0  ;;  %v4557_v47 = vsub.f32 %v4187_v58, %v4181_v40 }
 0x783   :  { %v4279_v32 = vpop.eup %3143 }
 0x784   :  { %v1152_v26 = vsel %vm883_vm0, %v4279_v32, 0.0 }
 0x785   :  { %1153 = vadd.xlane.f32.xlu0 %v1152_v26 }
 0x790   :  { %1826 = vrot.lane.b32.xlu1 %v1810_v43, %s3442_s28 }
 0x794   :  { %1828 = vrot.lane.b32.xlu1 %v1811_v31, %s3442_s28 }
 0x7cf   :  { %v1136_v49 = vpop.xlane.xlu0 %1135 }
 0x7d0   :  { %3145 = vrcp.f32 %v1136_v49 }
 0x7d1   :  { %v1133_v56 = vpop.xlane.xlu1 %1132 }
 0x7d2   :  { %3147 = vrcp.f32 %v1133_v56 }
 0x7d5   :  { %v1139_v8 = vpop.xlane.xlu1 %1138 }
 0x7d6   :  { %3149 = vrcp.f32 %v1139_v8  ;;  %v3009_v8 = vld [vmem:[%s4544_s17 + $0x8] sm:$0xff]  }
 0x7d9   :  { %v1142_v10 = vpop.xlane.xlu0 %1141 }
 0x7da   :  { %v3146_v4 = vpop.eup %3145  ;;  %3151 = vrcp.f32 %v1142_v10 }
 0x7db   :  { %v4312_v45 = vmul.f32 %v3146_v4, %v4251_v24  ;;  %v1812_v24 = vmax.f32 %v1804_v30, 0.0  ;;  %v1814_v30 = vmax.f32 %v4555_v34, 0.0 }
 0x7dc   :  { %v3148_v23 = vpop.eup %3147 }
 0x7dd   :  { %1860 = vrot.lane.b32.xlu1 %v4312_v45, %s3452_s16  ;;  %v4317_v12 = vmul.f32 %v3148_v23, %v4255_v15 }
 0x7df   :  { %1858 = vrot.lane.b32.xlu0 %v4317_v12, %s3452_s16  ;;  %v2232_v29 = vpack.c.bf16 %v4312_v45, %v4317_v12  ;;  %v3013_v45 = vld [vmem:[%s4544_s17 + $0x28] sm:$0xff]   ;;  %v3014_v12 = vld [vmem:[%s4544_s17 + $0x30] sm:$0xff]  }
 0x7e0   :  { %v3150_v11 = vpop.eup %3149 }
 0x7e1   :  { %v4327_v52 = vmul.f32 %v3150_v11, %v4259_v9  ;;  %v1816_v9 = vmax.f32 %v4557_v47, 0.0 }
 0x7e3   :  { %1862 = vrot.lane.b32.xlu1 %v4327_v52, %s3452_s16  ;;  %1830 = vrot.lane.b32.xlu0 %v1812_v24, %s3442_s28 }
 0x7e4   :  { %v3152_v15 = vpop.eup %3151 }
 0x7e5   :  { %v4336_v26 = vmul.f32 %v3152_v15, %v4263_v62  ;;  %v4558_v62 = vsub.f32 %v4183_v5, %v4175_v18 }
 0x7e7   :  { %v2233_v42 = vpack.c.bf16 %v4336_v26, %v4327_v52  ;;  %1864 = vrot.lane.b32.xlu1 %v4336_v26, %s3452_s16  ;;  %1832 = vrot.lane.b32.xlu0 %v1813_v22, %s3442_s28  ;;  %v1817_v43 = vmax.f32 %v4558_v62, 0.0 }
 0x7eb   :  { %1834 = vrot.lane.b32.xlu0 %v1814_v30, %s3442_s28 }
 0x7ef   :  { %1836 = vrot.lane.b32.xlu0 %v1815_v21, %s3442_s28 }
 0x7f3   :  { %1838 = vrot.lane.b32.xlu0 %v1816_v9, %s3442_s28 }
 0x7f7   :  { %1840 = vrot.lane.b32.xlu0 %v1817_v43, %s3442_s28 }
 0x808   :  { %v1145_v36 = vpop.xlane.xlu1 %1144 }
 0x809   :  { %3153 = vrcp.f32 %v1145_v36 }
 0x80c   :  { %v1151_v28 = vpop.xlane.xlu1 %1150 }
 0x80e   :  { %v1148_v31 = vpop.xlane.xlu0 %1147 }
 0x80f   :  { %3155 = vrcp.f32 %v1148_v31  ;;  %v3016_v31 = vld [vmem:[%s4544_s17 + $0x40] ss:$0 sps:$4 sm:$0x33]  }
 0x810   :  { %3157 = vrcp.f32 %v1151_v28  ;;  %v1827_v1 = vpop.permute.xlu1 %1826 }
 0x812   :  { %v1154_v16 = vpop.xlane.xlu0 %1153 }
 0x813   :  { %v3154_v37 = vpop.eup %3153  ;;  %3159 = vrcp.f32 %v1154_v16  ;;  %v2318_v16 = vsel %vm2316_vm7, %v3016_v31, 0 }
 0x814   :  { %v4360_v40 = vmul.f32 %v3154_v37, %v4267_v44  ;;  %v1829_v57 = vpop.permute.xlu1 %1828 }
 0x815   :  { %v1883_v41 = vsel %vm883_vm0, %v4111_v6, %v1829_v57 }
 0x816   :  { %1866 = vrot.lane.b32.xlu1 %v4360_v40, %s3452_s16 }
 0x819   :  { %v3156_v58 = vpop.eup %3155 }
 0x81a   :  { %v4365_v18 = vmul.f32 %v3156_v58, %v4275_v54  ;;  %v3158_v5 = vpop.eup %3157 }
 0x81b   :  { %v4372_v7 = vmul.f32 %v3158_v5, %v4271_v38  ;;  %v1882_v38 = vsel %vm883_vm0, %v4117_v48, %v1827_v1 }
 0x81c   :  { %v2234_v27 = vpack.c.bf16 %v4365_v18, %v4360_v40  ;;  %1868 = vrot.lane.b32.xlu1 %v4365_v18, %s3452_s16 }
 0x81d   :  { %v3160_v35 = vpop.eup %3159 }
 0x81e   :  { %v4375_v44 = vmul.f32 %v3160_v35, %v4279_v32  ;;  %v3008_v32 = vld [vmem:[%s4544_s17] sm:$0xff]  }
 0x820   :  { %1870 = vrot.lane.b32.xlu1 %v4372_v7, %s3452_s16  ;;  %v2235_v54 = vpack.c.bf16 %v4375_v44, %v4372_v7 }
 0x824   :  { %1872 = vrot.lane.b32.xlu1 %v4375_v44, %s3452_s16 }
 0x84f   :  { %v1861_v13 = vpop.permute.xlu1 %1860 }
 0x850   :  { %v1892_v17 = vsel %vm1890_vm5, %v1883_v41, %v1861_v13 }
 0x851   :  { %v1859_v49 = vpop.permute.xlu0 %1858 }
 0x852   :  { %v1891_v25 = vsel %vm1890_vm5, %v1882_v38, %v1859_v49 }
 0x853   :  { %2540 = vmatmul.mubr.msk.f32.vlgmr.msra.gmra.mrb[24].mxu1 %vm1905_vm6, %v1891_v25  ;;  %2851 = vmatprep.mubr.msk.f32.mxu0 %vm1905_vm6, %v1891_v25  ;;  %v4470_v25 = vld [vmem:[#allocation17] ss:$0 sm:$0xff] }
 0x854   :  { %2852 = vmatmul.mubr.msk.f32.vlgmr.msra.gmra.mrb[56].mxu0 %vm1905_vm6, %v1892_v17  ;;  %2010 = vmatprep.mubr.f32.mxu1 %v3451_v2 }
 0x855   :  { %v1863_v48 = vpop.permute.xlu1 %1862  ;;  %v1831_v56 = vpop.permute.xlu0 %1830  ;;  %2321 = vmatpush1.bf16.msra.mxu1 %v3008_v32 }
 0x856   :  { %v1884_v6 = vsel %vm883_vm0, %v4137_v19, %v1831_v56  ;;  %2322 = vmatprep.subr.bf16.mxu1 %v3447_v0 }
 0x857   :  { %2541 = vmatmul.mubr.msk.f32.gmra.mrb[26].mxu1 %vm1905_vm6, %v1892_v17  ;;  %v1893_v10 = vsel %vm1890_vm5, %v1884_v6, %v1863_v48 }
 0x858   :  { %2854 = vmatprep.mubr.msk.f32.mxu0 %vm1905_vm6, %v1893_v10  ;;  %2016 = vmatprep.mubr.f32.mxu1 %v3451_v2 }
 0x859   :  { %v1865_v4 = vpop.permute.xlu1 %1864  ;;  %v1833_v23 = vpop.permute.xlu0 %1832  ;;  %2323 = vmatpush1.bf16.msra.mxu1 %v3009_v8 }
 0x85a   :  { %v1885_v11 = vsel %vm883_vm0, %v4131_v14, %v1833_v23  ;;  %2324 = vmatprep.subr.bf16.mxu1 %v3447_v0  ;;  %v4477_v23 = vld [vmem:[%s4541_s14] ss:$0 sm:$0xff]  ;;  %s3453_s14 = smov [#allocation19]  }
 0x85b   :  { %2542 = vmatmul.mubr.msk.f32.gmra.mrb[28].mxu1 %vm1905_vm6, %v1893_v10  ;;  %v1894_v19 = vsel %vm1890_vm5, %v1885_v11, %v1865_v4  ;;  %s2430_s24 = sshll.u32 %s3453_s14, 4  ;;  %s2431_s24 = int_to_ptr.vmem [resolvable:$true] %s2430_s24 }
 0x85c   :  { %2855 = vmatmul.mubr.msk.f32.gmra.mrb[58].mxu0 %vm1905_vm6, %v1894_v19  ;;  %2022 = vmatprep.mubr.f32.mxu1 %v3451_v2  ;;  %s3397_s25 = scalar_lea.vmem %s2431_s24, 512  ;;  %p3402_p11 = scmp.lt.s32.totalorder %s2431_s24, %s2431_s24 }
 0x85d   :  { %v1835_v24 = vpop.permute.xlu0 %1834  ;;  %p3398_p10 = scmp.ne.s32.totalorder %s2431_s24, %s3397_s25  ;;  %p3403_p12 = scmp.lt.s32.totalorder %s3397_s25, %s3397_s25 }
 0x85e   :  { %v1886_v22 = vsel %vm883_vm0, %v4157_v33, %v1835_v24 }
 0x85f   :  { %2543 = vmatmul.mubr.msk.f32.gmra.mrb[30].mxu1 %vm1905_vm6, %v1894_v19  ;;  %p3404_p13 = por %p3403_p12, %p3402_p11 }
 0x860   :  { %2028 = vmatprep.mubr.f32.mxu1 %v3451_v2 }
 0x861   :  { %v1837_v15 = vpop.permute.xlu0 %1836  ;;  %p3405_p0 = pnand %p3404_p13, %p3398_p10 }
 0x862   :  { %v1887_v39 = vsel %vm883_vm0, %v4151_v50, %v1837_v15 }
 0x865   :  { %v1839_v30 = vpop.permute.xlu0 %1838 }
 0x866   :  { %v1888_v33 = vsel %vm883_vm0, %v4177_v55, %v1839_v30  ;;  %v3010_v55 = vld [vmem:[%s4544_s17 + $0x10] sm:$0xff]  }
 0x867   :  { %2325 = vmatpush1.bf16.msra.mxu1 %v3010_v55 }
 0x868   :  { %2326 = vmatprep.subr.bf16.mxu1 %v3447_v0 }
 0x869   :  { %v1841_v62 = vpop.permute.xlu0 %1840 }
 0x86a   :  { %v1889_v50 = vsel %vm883_vm0, %v4171_v59, %v1841_v62  ;;  %v3011_v59 = vld [vmem:[%s4544_s17 + $0x18] sm:$0xff]  }
 0x86b   :  { %2327 = vmatpush1.bf16.msra.mxu1 %v3011_v59 }
 0x86c   :  { %2328 = vmatprep.subr.bf16.mxu1 %v3447_v0 }
 0x888   :  { %v1867_v14 = vpop.permute.xlu1 %1866 }
 0x889   :  { %v1895_v34 = vsel %vm1890_vm5, %v1886_v22, %v1867_v14 }
 0x88a   :  { %2544 = vmatmul.mubr.msk.f32.gmra.mrb[32].mxu1 %vm1905_vm6, %v1895_v34  ;;  %2857 = vmatprep.mubr.msk.f32.mxu0 %vm1905_vm6, %v1895_v34 }
 0x88b   :  { %2034 = vmatprep.mubr.f32.mxu1 %v3451_v2 }
 0x88e   :  { %v1869_v21 = vpop.permute.xlu1 %1868 }
 0x88f   :  { %v1896_v47 = vsel %vm1890_vm5, %v1887_v39, %v1869_v21 }
 0x890   :  { %2545 = vmatmul.mubr.msk.f32.gmra.mrb[34].mxu1 %vm1905_vm6, %v1896_v47  ;;  %2858 = vmatmul.mubr.msk.f32.gmra.mrb[60].mxu0 %vm1905_vm6, %v1896_v47 }
 0x891   :  { %2040 = vmatprep.mubr.f32.mxu1 %v3451_v2 }
 0x892   :  { %v1871_v9 = vpop.permute.xlu1 %1870 }
 0x893   :  { %v1897_v43 = vsel %vm1890_vm5, %v1888_v33, %v1871_v9 }
 0x894   :  { %2546 = vmatmul.mubr.msk.f32.gmra.mrb[36].mxu1 %vm1905_vm6, %v1897_v43  ;;  %2860 = vmatprep.mubr.msk.f32.mxu0 %vm1905_vm6, %v1897_v43 }
 0x895   :  { %2046 = vmatprep.mubr.f32.mxu1 %v3451_v2  ;;  %v3012_v2 = vld [vmem:[%s4544_s17 + $0x20] sm:$0xff]  }
 0x896   :  { %v1873_v36 = vpop.permute.xlu1 %1872  ;;  %2329 = vmatpush1.bf16.msra.mxu1 %v3012_v2 }
 0x897   :  { %v1898_v28 = vsel %vm1890_vm5, %v1889_v50, %v1873_v36  ;;  %2330 = vmatprep.subr.bf16.mxu1 %v3447_v0 }
 0x898   :  { %2547 = vmatmul.mubr.msk.f32.gmra.mrb[38].mxu1 %vm1905_vm6, %v1898_v28  ;;  %2861 = vmatmul.mubr.msk.f32.gmra.mrb[62].mxu0 %vm1905_vm6, %v1898_v28 }
 0x899   :  { %2568 = vmatprep.mubr.msk.bf16.mxu1 %vm883_vm0, %v2232_v29  ;;  %v3015_v29 = vld [vmem:[%s4544_s17 + $0x38] sm:$0xff]  }
 0x89a   :  { %2331 = vmatpush1.bf16.msra.mxu1 %v3013_v45 }
 0x89b   :  { %2332 = vmatprep.subr.bf16.mxu1 %v3447_v0 }
 0x89e   :  { %2333 = vmatpush1.bf16.msra.mxu1 %v3014_v12 }
 0x89f   :  { %2334 = vmatprep.subr.bf16.mxu1 %v3447_v0 }
 0x8a2   :  { %2335 = vmatpush1.bf16.msra.mxu1 %v3015_v29 }
 0x8a3   :  { %2336 = vmatprep.subr.bf16.mxu1 %v3447_v0 }
 0x8a6   :  { %2337 = vmatpush1.bf16.msra.mxu1 %v2318_v16 }
 0x926   :  { %v2006_v37 = vpop.f32.mrb[24].mxu1 }
 0x927   :  { %v2008_v58 = vpop.f32.mrb[25].mxu1  ;;  %v2853_v5 = vpop.f32.mrb[56].mxu0  ;;  %v2159_v0 = vsub.f32 %v4000_v60, %v2006_v37 }
 0x928   :  { %v2181_v35 = vadd.f32 1e-05, %v2008_v58  ;;  %v2119_v1 = vpop.f32.mrb[57].mxu0 }
 0x929   :  { %v2173_v8 = vmul.f32 %v4470_v25, %v2159_v0 }
 0x92a   :  { %3161 = vrsqrt.f32 %v2181_v35  ;;  %v2012_v57 = vpop.f32.mrb[26].mxu1 }
 0x92b   :  { %v2014_v13 = vpop.f32.mrb[27].mxu1  ;;  %v2160_v6 = vsub.f32 %v4003_v20, %v2012_v57 }
 0x92c   :  { %v2182_v38 = vadd.f32 1e-05, %v2014_v13 }
 0x92d   :  { %v2174_v24 = vmul.f32 %v4470_v25, %v2160_v6 }
 0x92e   :  { %3163 = vrsqrt.f32 %v2182_v38  ;;  %v2018_v49 = vpop.f32.mrb[28].mxu1 }
 0x92f   :  { %v2020_v32 = vpop.f32.mrb[29].mxu1  ;;  %v2856_v41 = vpop.f32.mrb[58].mxu0  ;;  %v2161_v15 = vsub.f32 %v4017_v53, %v2018_v49 }
 0x930   :  { %v2183_v17 = vadd.f32 1e-05, %v2020_v32  ;;  %v2129_v48 = vpop.f32.mrb[59].mxu0 }
 0x931   :  { %v2175_v30 = vmul.f32 %v4470_v25, %v2161_v15 }
 0x932   :  { %3165 = vrsqrt.f32 %v2183_v17  ;;  %v2024_v56 = vpop.f32.mrb[30].mxu1 }
 0x933   :  { %v2026_v10 = vpop.f32.mrb[31].mxu1  ;;  %v2162_v39 = vsub.f32 %v4020_v61, %v2024_v56 }
 0x934   :  { %v3162_v4 = vpop.eup %3161  ;;  %v2184_v60 = vadd.f32 1e-05, %v2026_v10 }
 0x935   :  { %v2197_v11 = vmul.f32 %v3162_v4, %v2173_v8  ;;  %v2176_v62 = vmul.f32 %v4470_v25, %v2162_v39 }
 0x936   :  { %3167 = vrsqrt.f32 %v2184_v60 }
 0x937   :  { %v2212_v19 = vadd.f32 %v4477_v23, %v2197_v11 }
 0x938   :  { %v3164_v22 = vpop.eup %3163 }
 0x939   :  { %v2220_v14 = vmul.f32 %v2212_v19, %v2119_v1  ;;  %v2198_v34 = vmul.f32 %v3164_v22, %v2174_v24 }
 0x93b   :  { %v2213_v20 = vadd.f32 %v4477_v23, %v2198_v34 }
 0x93c   :  { %v3166_v21 = vpop.eup %3165 }
 0x93d   :  { %v2199_v47 = vmul.f32 %v3166_v21, %v2175_v30  ;;  %v2221_v33 = vmul.f32 %v2853_v5, %v2213_v20 }
 0x93f   :  { %v2214_v9 = vadd.f32 %v4477_v23, %v2199_v47  ;;  %v2228_v43 = vpack.c.bf16 %v2221_v33, %v2220_v14 }
 0x940   :  { %v3168_v50 = vpop.eup %3167 }
 0x941   :  { %v2222_v36 = vmul.f32 %v2214_v9, %v2129_v48  ;;  %2353 = vmatmul.mubr.bf16.vlgmr.msra.gmra.mrb[40].mxu1 %v2228_v43  ;;  %v2200_v53 = vmul.f32 %v3168_v50, %v2176_v62 }
 0x942   :  { %2569 = vmatprep.mubr.msk.bf16.mxu1 %vm883_vm0, %v2233_v42 }
 0x943   :  { %v2215_v28 = vadd.f32 %v4477_v23, %v2200_v53 }
 0x945   :  { %v2223_v61 = vmul.f32 %v2856_v41, %v2215_v28 }
 0x947   :  { %v2229_v55 = vpack.c.bf16 %v2223_v61, %v2222_v36 }
 0x949   :  { %2361 = vmatmul.mubr.bf16.gmra.mrb[44].mxu1 %v2229_v55 }
 0x94a   :  { %2570 = vmatprep.mubr.msk.bf16.mxu1 %vm883_vm0, %v2234_v27 }
 0x95d   :  { %v2030_v59 = vpop.f32.mrb[32].mxu1 }
 0x95e   :  { %v2032_v2 = vpop.f32.mrb[33].mxu1  ;;  %v2163_v42 = vsub.f32 %v4035_v46, %v2030_v59 }
 0x95f   :  { %v2185_v45 = vadd.f32 1e-05, %v2032_v2 }
 0x960   :  { %v2177_v5 = vmul.f32 %v4470_v25, %v2163_v42 }
 0x961   :  { %3169 = vrsqrt.f32 %v2185_v45 }
 0x963   :  { %v2036_v12 = vpop.f32.mrb[34].mxu1  ;;  %v2859_v29 = vpop.f32.mrb[60].mxu0 }
 0x964   :  { %v2038_v31 = vpop.f32.mrb[35].mxu1  ;;  %v2139_v52 = vpop.f32.mrb[61].mxu0  ;;  %v2164_v35 = vsub.f32 %v4038_v51, %v2036_v12 }
 0x965   :  { %v2186_v26 = vadd.f32 1e-05, %v2038_v31 }
 0x966   :  { %v2178_v46 = vmul.f32 %v4470_v25, %v2164_v35 }
 0x967   :  { %3171 = vrsqrt.f32 %v2186_v26  ;;  %v2042_v16 = vpop.f32.mrb[36].mxu1 }
 0x968   :  { %v2044_v37 = vpop.f32.mrb[37].mxu1  ;;  %v2165_v32 = vsub.f32 %v4054_v63, %v2042_v16 }
 0x969   :  { %v2187_v58 = vadd.f32 1e-05, %v2044_v37 }
 0x96a   :  { %v2179_v56 = vmul.f32 %v4470_v25, %v2165_v32 }
 0x96b   :  { %v3170_v40 = vpop.eup %3169  ;;  %3173 = vrsqrt.f32 %v2187_v58  ;;  %v2048_v18 = vpop.f32.mrb[38].mxu1 }
 0x96c   :  { %v2862_v27 = vpop.f32.mrb[62].mxu0  ;;  %v2201_v1 = vmul.f32 %v3170_v40, %v2177_v5  ;;  %v2050_v57 = vpop.f32.mrb[39].mxu1  ;;  %v2166_v51 = vsub.f32 %v4058_v3, %v2048_v18 }
 0x96d   :  { %v2149_v13 = vpop.f32.mrb[63].mxu0  ;;  %v2188_v38 = vadd.f32 1e-05, %v2050_v57 }
 0x96e   :  { %v2216_v49 = vadd.f32 %v4477_v23, %v2201_v1  ;;  %v2180_v60 = vmul.f32 %v4470_v25, %v2166_v51 }
 0x96f   :  { %3175 = vrsqrt.f32 %v2188_v38 }
 0x970   :  { %v2224_v0 = vmul.f32 %v2216_v49, %v2139_v52 }
 0x971   :  { %v3172_v41 = vpop.eup %3171 }
 0x972   :  { %v2202_v17 = vmul.f32 %v3172_v41, %v2178_v46 }
 0x974   :  { %v2217_v48 = vadd.f32 %v4477_v23, %v2202_v17 }
 0x975   :  { %v3174_v8 = vpop.eup %3173 }
 0x976   :  { %v2225_v6 = vmul.f32 %v2859_v29, %v2217_v48  ;;  %v2203_v10 = vmul.f32 %v3174_v8, %v2179_v56 }
 0x978   :  { %v2230_v4 = vpack.c.bf16 %v2225_v6, %v2224_v0  ;;  %v2218_v11 = vadd.f32 %v4477_v23, %v2203_v10 }
 0x979   :  { %v3176_v19 = vpop.eup %3175 }
 0x97a   :  { %v2204_v24 = vmul.f32 %v3176_v19, %v2180_v60  ;;  %v2226_v15 = vmul.f32 %v2218_v11, %v2149_v13  ;;  %2369 = vmatmul.mubr.bf16.gmra.mrb[48].mxu1 %v2230_v4 }
 0x97b   :  { %2571 = vmatprep.mubr.msk.bf16.mxu1 %vm883_vm0, %v2235_v54 }
 0x97c   :  { %v2219_v63 = vadd.f32 %v4477_v23, %v2204_v24 }
 0x97e   :  { %v2227_v3 = vmul.f32 %v2862_v27, %v2219_v63 }
 0x980   :  { %v2231_v22 = vpack.c.bf16 %v2227_v3, %v2226_v15 }
 0x982   :  { %2377 = vmatmul.mubr.bf16.gmra.mrb[52].mxu1 %v2231_v22 }
 0xa14   :  { %v2354_v14 = vpop.f32.mrb[40].mxu1 }
 0xa15   :  { %v2356_v34 = vpop.f32.mrb[41].mxu1 }
 0xa16   :  { %v2357_v20 = vpop.f32.mrb[42].mxu1 }
 0xa17   :  { %v2591_v25 = vpack.c.bf16 %v2357_v20, %v2354_v14  ;;  %v2359_v30 = vpop.f32.mrb[43].mxu1 }
 0xa19   :  { %2592 = vst [vmem:[#allocation19] sm:$0xff] %v2591_v25  }
 0xa1c   :  { %v2362_v39 = vpop.f32.mrb[44].mxu1 }
 0xa1d   :  { %v2364_v21 = vpop.f32.mrb[45].mxu1 }
 0xa1e   :  { %v2365_v47 = vpop.f32.mrb[46].mxu1 }
 0xa1f   :  { %v2596_v33 = vpack.c.bf16 %v2365_v47, %v2362_v39  ;;  %v2367_v9 = vpop.f32.mrb[47].mxu1 }
 0xa21   :  { %2608 = vst [vmem:[#allocation19 + $0x8] sm:$0xff] %v2596_v33  }
 0xa4d   :  { %v2370_v7 = vpop.f32.mrb[48].mxu1 }
 0xa4e   :  { %v2372_v44 = vpop.f32.mrb[49].mxu1 }
 0xa4f   :  { %v2373_v54 = vpop.f32.mrb[50].mxu1 }
 0xa50   :  { %v2601_v62 = vpack.c.bf16 %v2373_v54, %v2370_v7  ;;  %v2375_v23 = vpop.f32.mrb[51].mxu1 }
 0xa52   :  { %2609 = vst [vmem:[#allocation19 + $0x10] sm:$0xff] %v2601_v62  }
 0xa55   :  { %v2378_v43 = vpop.f32.mrb[52].mxu1 }
 0xa56   :  { %v2380_v50 = vpop.f32.mrb[53].mxu1 }
 0xa57   :  { %v2381_v36 = vpop.f32.mrb[54].mxu1 }
 0xa58   :  { %v2606_v53 = vpack.c.bf16 %v2381_v36, %v2378_v43  ;;  %v2383_v28 = vpop.f32.mrb[55].mxu1 }
 0xa5a   :  { %2610 = vst [vmem:[#allocation19 + $0x18] sm:$0xff] %v2606_v53  }
 0xa5b   :  { %3408 = shalt.err (!%p3405_p0)
}
 0xa5c   :  { %s3409_s27 = scalar_lea.hbm %s4545_s18, 512 }
 0xa5d   :  { %p3410_p1 = scmp.ne.s32.totalorder %s4545_s18, %s3409_s27  ;;  %p3413_p2 = scmp.lt.u32.totalorder %s3409_s27, %s4545_s18 }
 0xa5f   :  { %p3415_p3 = pnand %p3413_p2, %p3410_p1 }
 0xa61   :  { %3418 = shalt.err (!%p3415_p3)
}
 0xa62   :  { %2436 = dma.vmem_to_hbm [thread:$0]  %s2431_s24, 512, %s4545_s18, [#allocation4], %s3441_s6, %s3441_s6, %s3442_s28  }
 0xa63   :  { %3431 = dma.done.wait [#allocation4], 512  }
 0xa64   :  { %3432 = vsyncadd [#allocation4], 4294966784 }
 0xa65   :  { %2440 = vsyncpa [#allocation3], 1 }
 0xa66   :  { %2441 = vsyncpa [#allocation6], 1 }
 0xa67   :  { %2442 = vsyncpa [#allocation9], 1 }
 0xa68   :  { %2443 = vsyncpa [#allocation12], 1 }
 0xa69   :  { %2444 = vsyncpa [#allocation15], 1 }
 0xa6a   :  { %2445 = vsyncpa [#allocation18], 1 }
 0xa6b   :  { %2446 = vsyncpa [#allocation4], 1 }

</bundles_post_ra>
